<compile_context>
chip_gen: v5e
topology: v5e:2x2
jax: 0.10.0
libtpu: 0.0.40
codegen_flags: <defaults>
</compile_context>

<pallas_src>
import functools

import numpy as np
import jax
import jax.numpy as jnp
from jax.experimental import pallas as pl
from jax.experimental.pallas import tpu as pltpu


# ----------------------- host-side operator construction ---------------------

def avgpool_matrix(out_size, in_size, k, stride, pad):
    """nn.AvgPool2d 1-D factor, count_include_pad=True (PyTorch default)."""
    A = np.zeros((out_size, in_size), dtype=np.float32)
    for i in range(out_size):
        start = i * stride - pad
        for t in range(k):
            j = start + t
            if 0 <= j < in_size:
                A[i, j] = 1.0 / k
    return A


def bilinear_matrix(out_size, in_size):
    """F.interpolate(mode='bilinear', align_corners=False) 1-D factor."""
    A = np.zeros((out_size, in_size), dtype=np.float32)
    if in_size == 1:
        A[:, 0] = 1.0
        return A
    scale = in_size / out_size
    for i in range(out_size):
        src = (i + 0.5) * scale - 0.5
        if src < 0.0:
            src = 0.0
        i0 = min(int(np.floor(src)), in_size - 1)
        i1 = min(i0 + 1, in_size - 1)
        w1 = src - i0
        A[i, i0] += 1.0 - w1
        A[i, i1] += w1
    return A


def conv_tap_masks(H, W):
    """(9, H*W) 0/1 masks: tap k=(dy+1)*3+(dx+1) valid iff source in-bounds."""
    ii, jj = np.meshgrid(np.arange(H), np.arange(W), indexing="ij")
    masks = np.zeros((9, H * W), np.float32)
    for k in range(9):
        dy, dx = k // 3 - 1, k % 3 - 1
        valid = (ii + dy >= 0) & (ii + dy < H) & (jj + dx >= 0) & (jj + dx < W)
        masks[k] = valid.reshape(-1).astype(np.float32)
    return masks


# ------------------------------ fused CIA kernel -----------------------------

def cia_kernel(x_ref, sC_ref, bC_ref, sP_ref, bP_ref, scmp_ref, bcmp_ref,
               wbr_ref, wsc_ref, wc_ref, wp_ref, mask_ref, k5t_ref, kut_ref,
               o_ref, *, H, W):
    f32 = jnp.float32
    bf16 = jnp.bfloat16
    HW = H * W
    Cb = wp_ref.shape[1]

    xm = x_ref[0]                              # (Ci, HW): lanes = pixels
    sC, bC = sC_ref[...], bC_ref[...]          # (5, Ci, 1) head/shortcut BN
    sP, bP = sP_ref[...], bP_ref[...]          # (3, Cb, 1) process BN
    scmp, bcmp = scmp_ref[...], bcmp_ref[...]  # (4, Cb, 1) compression BN
    wbr = wbr_ref[...]                         # (4, Cb, Ci)   bf16 1x1 heads
    wsc = wsc_ref[...]                         # (Co, Ci)      bf16 shortcut
    wc = wc_ref[...]                           # (4, Co, Cb)   bf16 compression
    wp = wp_ref[...]                           # (3, Cb, 9*Cb) bf16 3x3 (tap-major)
    masks = mask_ref[...]                      # (9, HW) f32 edge masks

    def bnrelu(v, s, b):                       # folded BN -> ReLU
        return jnp.maximum(v * s + b, 0.0)

    def head(j, act):                          # BN -> ReLU -> 1x1 conv, branch j
        a = bnrelu(act, sC[j], bC[j]).astype(bf16)
        return jnp.dot(wbr[j], a, preferred_element_type=f32)

    def tap_pieces(act):                       # 9 shifted + edge-masked copies
        pieces = []
        for k in range(9):
            dy, dx = k // 3 - 1, k % 3 - 1
            s = dy * W + dx                    # source offset on flat pixel axis
            shifted = act if s == 0 else pltpu.roll(act, (-s) % HW, 1)
            pieces.append(shifted * masks[k:k + 1, :])
        return pieces

    def conv3x3(act, j):                       # single matmul, K = 9*Cb
        stacked = jnp.concatenate(tap_pieces(act), axis=0).astype(bf16)
        return jnp.dot(wp[j], stacked, preferred_element_type=f32)

    def process(j, v):                         # BN -> ReLU -> 3x3 conv
        return conv3x3(bnrelu(v, sP[j], bP[j]), j)

    def comp(k, xk):                           # compression partial, branch k
        a = bnrelu(xk, scmp[k], bcmp[k]).astype(bf16)
        return jnp.dot(wc[k], a, preferred_element_type=f32)

    # shortcut first; compression partials are accumulated as branches finish
    out = jnp.dot(wsc, bnrelu(xm, sC[4], bC[4]).astype(bf16),
                  preferred_element_type=f32)

    # scale0
    x0 = head(0, xm)
    out = out + comp(0, x0)

    # scale1: 3x3/s1/p1 avg pool via the same rolls/masks (count_include_pad)
    pieces = tap_pieces(xm)
    pooled1 = pieces[0]
    for pc in pieces[1:]:
        pooled1 = pooled1 + pc
    x1 = process(0, head(1, pooled1 * (1.0 / 9.0)) + x0)
    out = out + comp(1, x1)

    # scale2: 5x5/s2/p2 avg pool (low-res operator) -> head -> bilinear upsample
    pooled2 = jnp.dot(xm, k5t_ref[...], preferred_element_type=f32)   # (Ci,H2W2)
    up2 = jnp.dot(head(2, pooled2), kut_ref[...], preferred_element_type=f32)
    x2 = process(1, up2 + x1)
    out = out + comp(2, x2)

    # scale3: global average pool -> head -> broadcast over pixels
    g = jnp.sum(xm, axis=1, keepdims=True) * (1.0 / HW)               # (Ci, 1)
    x3 = process(2, jnp.broadcast_to(head(3, g), (Cb, HW)) + x2)
    out = out + comp(3, x3)

    o_ref[...] = out[None, :, :]


def cia_pallas_call(x_flat, consts, H, W, Cb, Co):
    N, Ci, HW = x_flat.shape

    def const_spec(a):
        zeros = (0,) * a.ndim
        return pl.BlockSpec(a.shape, lambda n, _z=zeros: _z)

    kernel = functools.partial(cia_kernel, H=H, W=W)
    return pl.pallas_call(
        kernel,
        out_shape=jax.ShapeDtypeStruct((N, Co, HW), jnp.float32),
        grid=(N,),
        in_specs=[pl.BlockSpec((1, Ci, HW), lambda n: (n, 0, 0))]
                 + [const_spec(c) for c in consts],
        out_specs=pl.BlockSpec((1, Co, HW), lambda n: (n, 0, 0)),
        compiler_params=pltpu.CompilerParams(
            dimension_semantics=("parallel",),
            vmem_limit_bytes=32 * 1024 * 1024),
    )(x_flat, *consts)


# ------------------------------ parameters -----------------------------------

def init_params(key, Ci, Cb, Co):
    keys = jax.random.split(key, 32)
    it = iter(keys)

    def bn(c):
        k1, k2, k3, k4 = jax.random.split(next(it), 4)
        gamma = 1.0 + 0.1 * jax.random.normal(k1, (c,), jnp.float32)
        beta = 0.1 * jax.random.normal(k2, (c,), jnp.float32)
        mean = 0.1 * jax.random.normal(k3, (c,), jnp.float32)
        var = 1.0 + 0.1 * jax.random.uniform(k4, (c,), jnp.float32)
        s = gamma / jnp.sqrt(var + 1e-5)
        b = beta - mean * s
        return s, b

    def conv1(cin, cout):
        return 0.1 * jax.random.normal(next(it), (cout, cin), jnp.float32)

    def conv3(cin, cout):
        return 0.1 * jax.random.normal(next(it), (cout, cin, 3, 3), jnp.float32)

    p = {}
    p['s0_bn'], p['s0_w'] = bn(Ci), conv1(Ci, Cb)
    p['s1_bn'], p['s1_w'] = bn(Ci), conv1(Ci, Cb)
    p['s2_bn'], p['s2_w'] = bn(Ci), conv1(Ci, Cb)
    p['s3_bn'], p['s3_w'] = bn(Ci), conv1(Ci, Cb)
    p['p1_bn'], p['p1_w'] = bn(Cb), conv3(Cb, Cb)
    p['p2_bn'], p['p2_w'] = bn(Cb), conv3(Cb, Cb)
    p['p3_bn'], p['p3_w'] = bn(Cb), conv3(Cb, Cb)
    p['cmp_bn'], p['cmp_w'] = bn(4 * Cb), conv1(4 * Cb, Co)
    p['sc_bn'], p['sc_w'] = bn(Ci), conv1(Ci, Co)
    return p


def prepare_constants(params, H, W):
    Cb = params['s0_w'].shape[0]
    Co = params['sc_w'].shape[0]
    H2 = (H + 2 * 2 - 5) // 2 + 1              # AvgPool2d(5, stride=2, padding=2)
    W2 = (W + 2 * 2 - 5) // 2 + 1
    bf16 = jnp.bfloat16

    def col(v):                                # (C,) -> (C, 1): per-sublane BN
        return v.reshape(-1, 1)

    head_bn = ('s0_bn', 's1_bn', 's2_bn', 's3_bn', 'sc_bn')
    sC = jnp.stack([col(params[n][0]) for n in head_bn], axis=0)       # (5,Ci,1)
    bC = jnp.stack([col(params[n][1]) for n in head_bn], axis=0)
    proc_bn = ('p1_bn', 'p2_bn', 'p3_bn')
    sP = jnp.stack([col(params[n][0]) for n in proc_bn], axis=0)       # (3,Cb,1)
    bP = jnp.stack([col(params[n][1]) for n in proc_bn], axis=0)
    scmp = params['cmp_bn'][0].reshape(4, Cb, 1)                       # (4,Cb,1)
    bcmp = params['cmp_bn'][1].reshape(4, Cb, 1)

    wbr = jnp.stack([params[n] for n in ('s0_w', 's1_w', 's2_w', 's3_w')],
                    axis=0).astype(bf16)                               # (4,Cb,Ci)
    wsc = params['sc_w'].astype(bf16)                                  # (Co,Ci)
    wc = params['cmp_w'].reshape(Co, 4, Cb).transpose(1, 0, 2).astype(bf16)

    def w3flat(w):  # (Cb,Cb,3,3) -> (Cb, 9*Cb) with tap-major contraction axis
        return jnp.transpose(w, (0, 2, 3, 1)).reshape(Cb, 9 * Cb)
    wp = jnp.stack([w3flat(params[n]) for n in ('p1_w', 'p2_w', 'p3_w')],
                   axis=0).astype(bf16)                                # (3,Cb,9Cb)

    masks = jnp.asarray(conv_tap_masks(H, W))                          # (9, HW)

    # strided-pool / upsample operators applied on the lane (pixel) axis, f32
    k5 = np.kron(avgpool_matrix(H2, H, 5, 2, 2), avgpool_matrix(W2, W, 5, 2, 2))
    ku = np.kron(bilinear_matrix(H, H2), bilinear_matrix(W, W2))
    k5t = jnp.asarray(k5.T)                                            # (HW, H2W2)
    kut = jnp.asarray(ku.T)                                            # (H2W2, HW)

    consts = [sC, bC, sP, bP, scmp, bcmp, wbr, wsc, wc, wp, masks, k5t, kut]
    return consts, Cb, Co


# ------------------------------ CIA forward ----------------------------------

def build_cia_forward(params, H, W):
    """Fold/reshape constants ONCE on the host; return a cached jitted forward."""
    consts, Cb, Co = prepare_constants(params, H, W)

    @jax.jit
    def forward(x_nchw):
        N, Ci = x_nchw.shape[0], x_nchw.shape[1]
        x_flat = x_nchw.reshape(N, Ci, H * W)      # free reshape, no transpose
        out = cia_pallas_call(x_flat, consts, H, W, Cb, Co)   # (N, Co, HW)
        return out.reshape(N, Co, H, W)

    return forward


# ----------------------------------- main -------------------------------------

if __name__ == "__main__":
    key = jax.random.PRNGKey(0)
    kx, kp = jax.random.split(key)
    N, Ci, Cb, Co, H, W = 2, 16, 8, 16, 16, 16
    x = jax.random.normal(kx, (N, Ci, H, W), jnp.float32)
    params = init_params(kp, Ci, Cb, Co)

    cia_forward = build_cia_forward(params, H, W)
    out = jax.block_until_ready(cia_forward(x))

    assert out.shape == (N, Co, H, W), out.shape
    assert bool(jnp.all(jnp.isfinite(out)))
    print("KERNEL_OK")
</pallas_src>

<mosaic_0001>
module attributes {stable_mosaic.version = 11 : i64} {
  func.func @cia_kernel(%arg0: i32, %arg1: memref<1x16x256xf32, #tpu.memory_space<vmem>>, %arg2: memref<5x16x1xf32, #tpu.memory_space<vmem>>, %arg3: memref<5x16x1xf32, #tpu.memory_space<vmem>>, %arg4: memref<3x8x1xf32, #tpu.memory_space<vmem>>, %arg5: memref<3x8x1xf32, #tpu.memory_space<vmem>>, %arg6: memref<4x8x1xf32, #tpu.memory_space<vmem>>, %arg7: memref<4x8x1xf32, #tpu.memory_space<vmem>>, %arg8: memref<4x8x16xbf16, #tpu.memory_space<vmem>>, %arg9: memref<16x16xbf16, #tpu.memory_space<vmem>>, %arg10: memref<4x16x8xbf16, #tpu.memory_space<vmem>>, %arg11: memref<3x8x72xbf16, #tpu.memory_space<vmem>>, %arg12: memref<9x256xf32, #tpu.memory_space<vmem>>, %arg13: memref<256x64xf32, #tpu.memory_space<vmem>>, %arg14: memref<64x256xf32, #tpu.memory_space<vmem>>, %arg15: memref<1x16x256xf32, #tpu.memory_space<vmem>>) attributes {dimension_semantics = [#tpu.dimension_semantics<parallel>], iteration_bounds = array<i64: 2>, scalar_prefetch = 0 : i64, scratch_operands = 0 : i64, tpu.core_type = #tpu.core_type<tc>, window_params = [{transform_indices = @transform_0, window_bounds = array<i64: 1, 16, 256>}, {pipeline_mode = #tpu.pipeline_mode<synchronous>, transform_indices = @transform_1, window_bounds = array<i64: 5, 16, 1>}, {pipeline_mode = #tpu.pipeline_mode<synchronous>, transform_indices = @transform_2, window_bounds = array<i64: 5, 16, 1>}, {pipeline_mode = #tpu.pipeline_mode<synchronous>, transform_indices = @transform_3, window_bounds = array<i64: 3, 8, 1>}, {pipeline_mode = #tpu.pipeline_mode<synchronous>, transform_indices = @transform_4, window_bounds = array<i64: 3, 8, 1>}, {pipeline_mode = #tpu.pipeline_mode<synchronous>, transform_indices = @transform_5, window_bounds = array<i64: 4, 8, 1>}, {pipeline_mode = #tpu.pipeline_mode<synchronous>, transform_indices = @transform_6, window_bounds = array<i64: 4, 8, 1>}, {pipeline_mode = #tpu.pipeline_mode<synchronous>, transform_indices = @transform_7, window_bounds = array<i64: 4, 8, 16>}, {pipeline_mode = #tpu.pipeline_mode<synchronous>, transform_indices = @transform_8, window_bounds = array<i64: 16, 16>}, {pipeline_mode = #tpu.pipeline_mode<synchronous>, transform_indices = @transform_9, window_bounds = array<i64: 4, 16, 8>}, {pipeline_mode = #tpu.pipeline_mode<synchronous>, transform_indices = @transform_10, window_bounds = array<i64: 3, 8, 72>}, {pipeline_mode = #tpu.pipeline_mode<synchronous>, transform_indices = @transform_11, window_bounds = array<i64: 9, 256>}, {pipeline_mode = #tpu.pipeline_mode<synchronous>, transform_indices = @transform_12, window_bounds = array<i64: 256, 64>}, {pipeline_mode = #tpu.pipeline_mode<synchronous>, transform_indices = @transform_13, window_bounds = array<i64: 64, 256>}, {transform_indices = @transform_14, window_bounds = array<i64: 1, 16, 256>}]} {
    %c0 = arith.constant 0 : index
    %c0_0 = arith.constant 0 : index
    %c0_1 = arith.constant 0 : index
    %0 = vector.load %arg1[%c0, %c0_0, %c0_1] : memref<1x16x256xf32, #tpu.memory_space<vmem>>, vector<1x16x256xf32>
    %1 = vector.shape_cast %0 : vector<1x16x256xf32> to vector<16x256xf32>
    %c0_2 = arith.constant 0 : index
    %c0_3 = arith.constant 0 : index
    %c0_4 = arith.constant 0 : index
    %2 = vector.load %arg2[%c0_2, %c0_3, %c0_4] : memref<5x16x1xf32, #tpu.memory_space<vmem>>, vector<5x16x1xf32>
    %c0_5 = arith.constant 0 : index
    %c0_6 = arith.constant 0 : index
    %c0_7 = arith.constant 0 : index
    %3 = vector.load %arg3[%c0_5, %c0_6, %c0_7] : memref<5x16x1xf32, #tpu.memory_space<vmem>>, vector<5x16x1xf32>
    %c0_8 = arith.constant 0 : index
    %c0_9 = arith.constant 0 : index
    %c0_10 = arith.constant 0 : index
    %4 = vector.load %arg4[%c0_8, %c0_9, %c0_10] : memref<3x8x1xf32, #tpu.memory_space<vmem>>, vector<3x8x1xf32>
    %c0_11 = arith.constant 0 : index
    %c0_12 = arith.constant 0 : index
    %c0_13 = arith.constant 0 : index
    %5 = vector.load %arg5[%c0_11, %c0_12, %c0_13] : memref<3x8x1xf32, #tpu.memory_space<vmem>>, vector<3x8x1xf32>
    %c0_14 = arith.constant 0 : index
    %c0_15 = arith.constant 0 : index
    %c0_16 = arith.constant 0 : index
    %6 = vector.load %arg6[%c0_14, %c0_15, %c0_16] : memref<4x8x1xf32, #tpu.memory_space<vmem>>, vector<4x8x1xf32>
    %c0_17 = arith.constant 0 : index
    %c0_18 = arith.constant 0 : index
    %c0_19 = arith.constant 0 : index
    %7 = vector.load %arg7[%c0_17, %c0_18, %c0_19] : memref<4x8x1xf32, #tpu.memory_space<vmem>>, vector<4x8x1xf32>
    %c0_20 = arith.constant 0 : index
    %c0_21 = arith.constant 0 : index
    %c0_22 = arith.constant 0 : index
    %8 = vector.load %arg8[%c0_20, %c0_21, %c0_22] : memref<4x8x16xbf16, #tpu.memory_space<vmem>>, vector<4x8x16xbf16>
    %c0_23 = arith.constant 0 : index
    %c0_24 = arith.constant 0 : index
    %9 = vector.load %arg9[%c0_23, %c0_24] : memref<16x16xbf16, #tpu.memory_space<vmem>>, vector<16x16xbf16>
    %c0_25 = arith.constant 0 : index
    %c0_26 = arith.constant 0 : index
    %c0_27 = arith.constant 0 : index
    %10 = vector.load %arg10[%c0_25, %c0_26, %c0_27] : memref<4x16x8xbf16, #tpu.memory_space<vmem>>, vector<4x16x8xbf16>
    %c0_28 = arith.constant 0 : index
    %c0_29 = arith.constant 0 : index
    %c0_30 = arith.constant 0 : index
    %11 = vector.load %arg11[%c0_28, %c0_29, %c0_30] : memref<3x8x72xbf16, #tpu.memory_space<vmem>>, vector<3x8x72xbf16>
    %c0_31 = arith.constant 0 : index
    %c0_32 = arith.constant 0 : index
    %12 = vector.load %arg12[%c0_31, %c0_32] : memref<9x256xf32, #tpu.memory_space<vmem>>, vector<9x256xf32>
    %13 = vector.extract_strided_slice %2 {offsets = [4, 0, 0], sizes = [1, 16, 1], strides = [1, 1, 1]} : vector<5x16x1xf32> to vector<1x16x1xf32>
    %14 = vector.shape_cast %13 : vector<1x16x1xf32> to vector<16x1xf32>
    %15 = vector.extract_strided_slice %3 {offsets = [4, 0, 0], sizes = [1, 16, 1], strides = [1, 1, 1]} : vector<5x16x1xf32> to vector<1x16x1xf32>
    %16 = vector.shape_cast %15 : vector<1x16x1xf32> to vector<16x1xf32>
    %17 = vector.broadcast %14 : vector<16x1xf32> to vector<16x256xf32>
    %18 = arith.mulf %1, %17 : vector<16x256xf32>
    %19 = vector.broadcast %16 : vector<16x1xf32> to vector<16x256xf32>
    %20 = arith.addf %18, %19 : vector<16x256xf32>
    %cst = arith.constant 0.000000e+00 : f32
    %21 = vector.broadcast %cst : f32 to vector<16x256xf32>
    %22 = arith.maximumf %20, %21 : vector<16x256xf32>
    %23 = arith.truncf %22 : vector<16x256xf32> to vector<16x256xbf16>
    %cst_33 = arith.constant dense<0.000000e+00> : vector<16x256xf32>
    %24 = tpu.matmul %9, %23, %cst_33 {dimension_numbers = #tpu.dot_dimension_numbers<[1], [0], [0], [1], [0, 0, 1, 1], [], []>} : vector<16x16xbf16>, vector<16x256xbf16>, vector<16x256xf32> -> vector<16x256xf32>
    %25 = vector.extract_strided_slice %2 {offsets = [0, 0, 0], sizes = [1, 16, 1], strides = [1, 1, 1]} : vector<5x16x1xf32> to vector<1x16x1xf32>
    %26 = vector.shape_cast %25 : vector<1x16x1xf32> to vector<16x1xf32>
    %27 = vector.extract_strided_slice %3 {offsets = [0, 0, 0], sizes = [1, 16, 1], strides = [1, 1, 1]} : vector<5x16x1xf32> to vector<1x16x1xf32>
    %28 = vector.shape_cast %27 : vector<1x16x1xf32> to vector<16x1xf32>
    %29 = vector.broadcast %26 : vector<16x1xf32> to vector<16x256xf32>
    %30 = arith.mulf %1, %29 : vector<16x256xf32>
    %31 = vector.broadcast %28 : vector<16x1xf32> to vector<16x256xf32>
    %32 = arith.addf %30, %31 : vector<16x256xf32>
    %cst_34 = arith.constant 0.000000e+00 : f32
    %33 = vector.broadcast %cst_34 : f32 to vector<16x256xf32>
    %34 = arith.maximumf %32, %33 : vector<16x256xf32>
    %35 = arith.truncf %34 : vector<16x256xf32> to vector<16x256xbf16>
    %36 = vector.extract_strided_slice %8 {offsets = [0, 0, 0], sizes = [1, 8, 16], strides = [1, 1, 1]} : vector<4x8x16xbf16> to vector<1x8x16xbf16>
    %37 = vector.shape_cast %36 : vector<1x8x16xbf16> to vector<8x16xbf16>
    %cst_35 = arith.constant dense<0.000000e+00> : vector<8x256xf32>
    %38 = tpu.matmul %37, %35, %cst_35 {dimension_numbers = #tpu.dot_dimension_numbers<[1], [0], [0], [1], [0, 0, 1, 1], [], []>} : vector<8x16xbf16>, vector<16x256xbf16>, vector<8x256xf32> -> vector<8x256xf32>
    %39 = vector.extract_strided_slice %6 {offsets = [0, 0, 0], sizes = [1, 8, 1], strides = [1, 1, 1]} : vector<4x8x1xf32> to vector<1x8x1xf32>
    %40 = vector.shape_cast %39 : vector<1x8x1xf32> to vector<8x1xf32>
    %41 = vector.extract_strided_slice %7 {offsets = [0, 0, 0], sizes = [1, 8, 1], strides = [1, 1, 1]} : vector<4x8x1xf32> to vector<1x8x1xf32>
    %42 = vector.shape_cast %41 : vector<1x8x1xf32> to vector<8x1xf32>
    %43 = vector.broadcast %40 : vector<8x1xf32> to vector<8x256xf32>
    %44 = arith.mulf %38, %43 : vector<8x256xf32>
    %45 = vector.broadcast %42 : vector<8x1xf32> to vector<8x256xf32>
    %46 = arith.addf %44, %45 : vector<8x256xf32>
    %cst_36 = arith.constant 0.000000e+00 : f32
    %47 = vector.broadcast %cst_36 : f32 to vector<8x256xf32>
    %48 = arith.maximumf %46, %47 : vector<8x256xf32>
    %49 = arith.truncf %48 : vector<8x256xf32> to vector<8x256xbf16>
    %50 = vector.extract_strided_slice %10 {offsets = [0, 0, 0], sizes = [1, 16, 8], strides = [1, 1, 1]} : vector<4x16x8xbf16> to vector<1x16x8xbf16>
    %51 = vector.shape_cast %50 : vector<1x16x8xbf16> to vector<16x8xbf16>
    %cst_37 = arith.constant dense<0.000000e+00> : vector<16x256xf32>
    %52 = tpu.matmul %51, %49, %cst_37 {dimension_numbers = #tpu.dot_dimension_numbers<[1], [0], [0], [1], [0, 0, 1, 1], [], []>} : vector<16x8xbf16>, vector<8x256xbf16>, vector<16x256xf32> -> vector<16x256xf32>
    %53 = arith.addf %24, %52 : vector<16x256xf32>
    %c17_i32 = arith.constant 17 : i32
    %54 = tpu.dynamic_rotate %1 by %c17_i32 dim 1 : vector<16x256xf32>, i32 -> vector<16x256xf32>
    %55 = vector.extract_strided_slice %12 {offsets = [0, 0], sizes = [1, 256], strides = [1, 1]} : vector<9x256xf32> to vector<1x256xf32>
    %56 = vector.broadcast %55 : vector<1x256xf32> to vector<16x256xf32>
    %57 = arith.mulf %54, %56 : vector<16x256xf32>
    %c16_i32 = arith.constant 16 : i32
    %58 = tpu.dynamic_rotate %1 by %c16_i32 dim 1 : vector<16x256xf32>, i32 -> vector<16x256xf32>
    %59 = vector.extract_strided_slice %12 {offsets = [1, 0], sizes = [1, 256], strides = [1, 1]} : vector<9x256xf32> to vector<1x256xf32>
    %60 = vector.broadcast %59 : vector<1x256xf32> to vector<16x256xf32>
    %61 = arith.mulf %58, %60 : vector<16x256xf32>
    %c15_i32 = arith.constant 15 : i32
    %62 = tpu.dynamic_rotate %1 by %c15_i32 dim 1 : vector<16x256xf32>, i32 -> vector<16x256xf32>
    %63 = vector.extract_strided_slice %12 {offsets = [2, 0], sizes = [1, 256], strides = [1, 1]} : vector<9x256xf32> to vector<1x256xf32>
    %64 = vector.broadcast %63 : vector<1x256xf32> to vector<16x256xf32>
    %65 = arith.mulf %62, %64 : vector<16x256xf32>
    %c1_i32 = arith.constant 1 : i32
    %66 = tpu.dynamic_rotate %1 by %c1_i32 dim 1 : vector<16x256xf32>, i32 -> vector<16x256xf32>
    %67 = vector.extract_strided_slice %12 {offsets = [3, 0], sizes = [1, 256], strides = [1, 1]} : vector<9x256xf32> to vector<1x256xf32>
    %68 = vector.broadcast %67 : vector<1x256xf32> to vector<16x256xf32>
    %69 = arith.mulf %66, %68 : vector<16x256xf32>
    %70 = vector.extract_strided_slice %12 {offsets = [4, 0], sizes = [1, 256], strides = [1, 1]} : vector<9x256xf32> to vector<1x256xf32>
    %71 = vector.broadcast %70 : vector<1x256xf32> to vector<16x256xf32>
    %72 = arith.mulf %1, %71 : vector<16x256xf32>
    %c255_i32 = arith.constant 255 : i32
    %73 = tpu.dynamic_rotate %1 by %c255_i32 dim 1 : vector<16x256xf32>, i32 -> vector<16x256xf32>
    %74 = vector.extract_strided_slice %12 {offsets = [5, 0], sizes = [1, 256], strides = [1, 1]} : vector<9x256xf32> to vector<1x256xf32>
    %75 = vector.broadcast %74 : vector<1x256xf32> to vector<16x256xf32>
    %76 = arith.mulf %73, %75 : vector<16x256xf32>
    %c241_i32 = arith.constant 241 : i32
    %77 = tpu.dynamic_rotate %1 by %c241_i32 dim 1 : vector<16x256xf32>, i32 -> vector<16x256xf32>
    %78 = vector.extract_strided_slice %12 {offsets = [6, 0], sizes = [1, 256], strides = [1, 1]} : vector<9x256xf32> to vector<1x256xf32>
    %79 = vector.broadcast %78 : vector<1x256xf32> to vector<16x256xf32>
    %80 = arith.mulf %77, %79 : vector<16x256xf32>
    %c240_i32 = arith.constant 240 : i32
    %81 = tpu.dynamic_rotate %1 by %c240_i32 dim 1 : vector<16x256xf32>, i32 -> vector<16x256xf32>
    %82 = vector.extract_strided_slice %12 {offsets = [7, 0], sizes = [1, 256], strides = [1, 1]} : vector<9x256xf32> to vector<1x256xf32>
    %83 = vector.broadcast %82 : vector<1x256xf32> to vector<16x256xf32>
    %84 = arith.mulf %81, %83 : vector<16x256xf32>
    %c239_i32 = arith.constant 239 : i32
    %85 = tpu.dynamic_rotate %1 by %c239_i32 dim 1 : vector<16x256xf32>, i32 -> vector<16x256xf32>
    %86 = vector.extract_strided_slice %12 {offsets = [8, 0], sizes = [1, 256], strides = [1, 1]} : vector<9x256xf32> to vector<1x256xf32>
    %87 = vector.broadcast %86 : vector<1x256xf32> to vector<16x256xf32>
    %88 = arith.mulf %85, %87 : vector<16x256xf32>
    %89 = arith.addf %57, %61 : vector<16x256xf32>
    %90 = arith.addf %89, %65 : vector<16x256xf32>
    %91 = arith.addf %90, %69 : vector<16x256xf32>
    %92 = arith.addf %91, %72 : vector<16x256xf32>
    %93 = arith.addf %92, %76 : vector<16x256xf32>
    %94 = arith.addf %93, %80 : vector<16x256xf32>
    %95 = arith.addf %94, %84 : vector<16x256xf32>
    %96 = arith.addf %95, %88 : vector<16x256xf32>
    %cst_38 = arith.constant 0.111111112 : f32
    %97 = vector.broadcast %cst_38 : f32 to vector<16x256xf32>
    %98 = arith.mulf %96, %97 : vector<16x256xf32>
    %99 = vector.extract_strided_slice %2 {offsets = [1, 0, 0], sizes = [1, 16, 1], strides = [1, 1, 1]} : vector<5x16x1xf32> to vector<1x16x1xf32>
    %100 = vector.shape_cast %99 : vector<1x16x1xf32> to vector<16x1xf32>
    %101 = vector.extract_strided_slice %3 {offsets = [1, 0, 0], sizes = [1, 16, 1], strides = [1, 1, 1]} : vector<5x16x1xf32> to vector<1x16x1xf32>
    %102 = vector.shape_cast %101 : vector<1x16x1xf32> to vector<16x1xf32>
    %103 = vector.broadcast %100 : vector<16x1xf32> to vector<16x256xf32>
    %104 = arith.mulf %98, %103 : vector<16x256xf32>
    %105 = vector.broadcast %102 : vector<16x1xf32> to vector<16x256xf32>
    %106 = arith.addf %104, %105 : vector<16x256xf32>
    %cst_39 = arith.constant 0.000000e+00 : f32
    %107 = vector.broadcast %cst_39 : f32 to vector<16x256xf32>
    %108 = arith.maximumf %106, %107 : vector<16x256xf32>
    %109 = arith.truncf %108 : vector<16x256xf32> to vector<16x256xbf16>
    %110 = vector.extract_strided_slice %8 {offsets = [1, 0, 0], sizes = [1, 8, 16], strides = [1, 1, 1]} : vector<4x8x16xbf16> to vector<1x8x16xbf16>
    %111 = vector.shape_cast %110 : vector<1x8x16xbf16> to vector<8x16xbf16>
    %cst_40 = arith.constant dense<0.000000e+00> : vector<8x256xf32>
    %112 = tpu.matmul %111, %109, %cst_40 {dimension_numbers = #tpu.dot_dimension_numbers<[1], [0], [0], [1], [0, 0, 1, 1], [], []>} : vector<8x16xbf16>, vector<16x256xbf16>, vector<8x256xf32> -> vector<8x256xf32>
    %113 = arith.addf %112, %38 : vector<8x256xf32>
    %114 = vector.extract_strided_slice %4 {offsets = [0, 0, 0], sizes = [1, 8, 1], strides = [1, 1, 1]} : vector<3x8x1xf32> to vector<1x8x1xf32>
    %115 = vector.shape_cast %114 : vector<1x8x1xf32> to vector<8x1xf32>
    %116 = vector.extract_strided_slice %5 {offsets = [0, 0, 0], sizes = [1, 8, 1], strides = [1, 1, 1]} : vector<3x8x1xf32> to vector<1x8x1xf32>
    %117 = vector.shape_cast %116 : vector<1x8x1xf32> to vector<8x1xf32>
    %118 = vector.broadcast %115 : vector<8x1xf32> to vector<8x256xf32>
    %119 = arith.mulf %113, %118 : vector<8x256xf32>
    %120 = vector.broadcast %117 : vector<8x1xf32> to vector<8x256xf32>
    %121 = arith.addf %119, %120 : vector<8x256xf32>
    %cst_41 = arith.constant 0.000000e+00 : f32
    %122 = vector.broadcast %cst_41 : f32 to vector<8x256xf32>
    %123 = arith.maximumf %121, %122 : vector<8x256xf32>
    %c17_i32_42 = arith.constant 17 : i32
    %124 = tpu.dynamic_rotate %123 by %c17_i32_42 dim 1 : vector<8x256xf32>, i32 -> vector<8x256xf32>
    %125 = vector.extract_strided_slice %12 {offsets = [0, 0], sizes = [1, 256], strides = [1, 1]} : vector<9x256xf32> to vector<1x256xf32>
    %126 = vector.broadcast %125 : vector<1x256xf32> to vector<8x256xf32>
    %127 = arith.mulf %124, %126 : vector<8x256xf32>
    %c16_i32_43 = arith.constant 16 : i32
    %128 = tpu.dynamic_rotate %123 by %c16_i32_43 dim 1 : vector<8x256xf32>, i32 -> vector<8x256xf32>
    %129 = vector.extract_strided_slice %12 {offsets = [1, 0], sizes = [1, 256], strides = [1, 1]} : vector<9x256xf32> to vector<1x256xf32>
    %130 = vector.broadcast %129 : vector<1x256xf32> to vector<8x256xf32>
    %131 = arith.mulf %128, %130 : vector<8x256xf32>
    %c15_i32_44 = arith.constant 15 : i32
    %132 = tpu.dynamic_rotate %123 by %c15_i32_44 dim 1 : vector<8x256xf32>, i32 -> vector<8x256xf32>
    %133 = vector.extract_strided_slice %12 {offsets = [2, 0], sizes = [1, 256], strides = [1, 1]} : vector<9x256xf32> to vector<1x256xf32>
    %134 = vector.broadcast %133 : vector<1x256xf32> to vector<8x256xf32>
    %135 = arith.mulf %132, %134 : vector<8x256xf32>
    %c1_i32_45 = arith.constant 1 : i32
    %136 = tpu.dynamic_rotate %123 by %c1_i32_45 dim 1 : vector<8x256xf32>, i32 -> vector<8x256xf32>
    %137 = vector.extract_strided_slice %12 {offsets = [3, 0], sizes = [1, 256], strides = [1, 1]} : vector<9x256xf32> to vector<1x256xf32>
    %138 = vector.broadcast %137 : vector<1x256xf32> to vector<8x256xf32>
    %139 = arith.mulf %136, %138 : vector<8x256xf32>
    %140 = vector.extract_strided_slice %12 {offsets = [4, 0], sizes = [1, 256], strides = [1, 1]} : vector<9x256xf32> to vector<1x256xf32>
    %141 = vector.broadcast %140 : vector<1x256xf32> to vector<8x256xf32>
    %142 = arith.mulf %123, %141 : vector<8x256xf32>
    %c255_i32_46 = arith.constant 255 : i32
    %143 = tpu.dynamic_rotate %123 by %c255_i32_46 dim 1 : vector<8x256xf32>, i32 -> vector<8x256xf32>
    %144 = vector.extract_strided_slice %12 {offsets = [5, 0], sizes = [1, 256], strides = [1, 1]} : vector<9x256xf32> to vector<1x256xf32>
    %145 = vector.broadcast %144 : vector<1x256xf32> to vector<8x256xf32>
    %146 = arith.mulf %143, %145 : vector<8x256xf32>
    %c241_i32_47 = arith.constant 241 : i32
    %147 = tpu.dynamic_rotate %123 by %c241_i32_47 dim 1 : vector<8x256xf32>, i32 -> vector<8x256xf32>
    %148 = vector.extract_strided_slice %12 {offsets = [6, 0], sizes = [1, 256], strides = [1, 1]} : vector<9x256xf32> to vector<1x256xf32>
    %149 = vector.broadcast %148 : vector<1x256xf32> to vector<8x256xf32>
    %150 = arith.mulf %147, %149 : vector<8x256xf32>
    %c240_i32_48 = arith.constant 240 : i32
    %151 = tpu.dynamic_rotate %123 by %c240_i32_48 dim 1 : vector<8x256xf32>, i32 -> vector<8x256xf32>
    %152 = vector.extract_strided_slice %12 {offsets = [7, 0], sizes = [1, 256], strides = [1, 1]} : vector<9x256xf32> to vector<1x256xf32>
    %153 = vector.broadcast %152 : vector<1x256xf32> to vector<8x256xf32>
    %154 = arith.mulf %151, %153 : vector<8x256xf32>
    %c239_i32_49 = arith.constant 239 : i32
    %155 = tpu.dynamic_rotate %123 by %c239_i32_49 dim 1 : vector<8x256xf32>, i32 -> vector<8x256xf32>
    %156 = vector.extract_strided_slice %12 {offsets = [8, 0], sizes = [1, 256], strides = [1, 1]} : vector<9x256xf32> to vector<1x256xf32>
    %157 = vector.broadcast %156 : vector<1x256xf32> to vector<8x256xf32>
    %158 = arith.mulf %155, %157 : vector<8x256xf32>
    %159 = tpu.concatenate %127, %131, %135, %139, %142, %146, %150, %154, %158 in 0 : vector<8x256xf32>, vector<8x256xf32>, vector<8x256xf32>, vector<8x256xf32>, vector<8x256xf32>, vector<8x256xf32>, vector<8x256xf32>, vector<8x256xf32>, vector<8x256xf32> -> vector<72x256xf32>
    %160 = arith.truncf %159 : vector<72x256xf32> to vector<72x256xbf16>
    %161 = vector.extract_strided_slice %11 {offsets = [0, 0, 0], sizes = [1, 8, 72], strides = [1, 1, 1]} : vector<3x8x72xbf16> to vector<1x8x72xbf16>
    %162 = vector.shape_cast %161 : vector<1x8x72xbf16> to vector<8x72xbf16>
    %cst_50 = arith.constant dense<0.000000e+00> : vector<8x256xf32>
    %163 = tpu.matmul %162, %160, %cst_50 {dimension_numbers = #tpu.dot_dimension_numbers<[1], [0], [0], [1], [0, 0, 1, 1], [], []>} : vector<8x72xbf16>, vector<72x256xbf16>, vector<8x256xf32> -> vector<8x256xf32>
    %164 = vector.extract_strided_slice %6 {offsets = [1, 0, 0], sizes = [1, 8, 1], strides = [1, 1, 1]} : vector<4x8x1xf32> to vector<1x8x1xf32>
    %165 = vector.shape_cast %164 : vector<1x8x1xf32> to vector<8x1xf32>
    %166 = vector.extract_strided_slice %7 {offsets = [1, 0, 0], sizes = [1, 8, 1], strides = [1, 1, 1]} : vector<4x8x1xf32> to vector<1x8x1xf32>
    %167 = vector.shape_cast %166 : vector<1x8x1xf32> to vector<8x1xf32>
    %168 = vector.broadcast %165 : vector<8x1xf32> to vector<8x256xf32>
    %169 = arith.mulf %163, %168 : vector<8x256xf32>
    %170 = vector.broadcast %167 : vector<8x1xf32> to vector<8x256xf32>
    %171 = arith.addf %169, %170 : vector<8x256xf32>
    %cst_51 = arith.constant 0.000000e+00 : f32
    %172 = vector.broadcast %cst_51 : f32 to vector<8x256xf32>
    %173 = arith.maximumf %171, %172 : vector<8x256xf32>
    %174 = arith.truncf %173 : vector<8x256xf32> to vector<8x256xbf16>
    %175 = vector.extract_strided_slice %10 {offsets = [1, 0, 0], sizes = [1, 16, 8], strides = [1, 1, 1]} : vector<4x16x8xbf16> to vector<1x16x8xbf16>
    %176 = vector.shape_cast %175 : vector<1x16x8xbf16> to vector<16x8xbf16>
    %cst_52 = arith.constant dense<0.000000e+00> : vector<16x256xf32>
    %177 = tpu.matmul %176, %174, %cst_52 {dimension_numbers = #tpu.dot_dimension_numbers<[1], [0], [0], [1], [0, 0, 1, 1], [], []>} : vector<16x8xbf16>, vector<8x256xbf16>, vector<16x256xf32> -> vector<16x256xf32>
    %178 = arith.addf %53, %177 : vector<16x256xf32>
    %c0_53 = arith.constant 0 : index
    %c0_54 = arith.constant 0 : index
    %179 = vector.load %arg13[%c0_53, %c0_54] : memref<256x64xf32, #tpu.memory_space<vmem>>, vector<256x64xf32>
    %cst_55 = arith.constant dense<0.000000e+00> : vector<16x64xf32>
    %180 = tpu.matmul %1, %179, %cst_55 {dimension_numbers = #tpu.dot_dimension_numbers<[1], [0], [0], [1], [0, 0, 1, 1], [], []>} : vector<16x256xf32>, vector<256x64xf32>, vector<16x64xf32> -> vector<16x64xf32>
    %181 = vector.extract_strided_slice %2 {offsets = [2, 0, 0], sizes = [1, 16, 1], strides = [1, 1, 1]} : vector<5x16x1xf32> to vector<1x16x1xf32>
    %182 = vector.shape_cast %181 : vector<1x16x1xf32> to vector<16x1xf32>
    %183 = vector.extract_strided_slice %3 {offsets = [2, 0, 0], sizes = [1, 16, 1], strides = [1, 1, 1]} : vector<5x16x1xf32> to vector<1x16x1xf32>
    %184 = vector.shape_cast %183 : vector<1x16x1xf32> to vector<16x1xf32>
    %185 = vector.broadcast %182 : vector<16x1xf32> to vector<16x64xf32>
    %186 = arith.mulf %180, %185 : vector<16x64xf32>
    %187 = vector.broadcast %184 : vector<16x1xf32> to vector<16x64xf32>
    %188 = arith.addf %186, %187 : vector<16x64xf32>
    %cst_56 = arith.constant 0.000000e+00 : f32
    %189 = vector.broadcast %cst_56 : f32 to vector<16x64xf32>
    %190 = arith.maximumf %188, %189 : vector<16x64xf32>
    %191 = arith.truncf %190 : vector<16x64xf32> to vector<16x64xbf16>
    %192 = vector.extract_strided_slice %8 {offsets = [2, 0, 0], sizes = [1, 8, 16], strides = [1, 1, 1]} : vector<4x8x16xbf16> to vector<1x8x16xbf16>
    %193 = vector.shape_cast %192 : vector<1x8x16xbf16> to vector<8x16xbf16>
    %cst_57 = arith.constant dense<0.000000e+00> : vector<8x64xf32>
    %194 = tpu.matmul %193, %191, %cst_57 {dimension_numbers = #tpu.dot_dimension_numbers<[1], [0], [0], [1], [0, 0, 1, 1], [], []>} : vector<8x16xbf16>, vector<16x64xbf16>, vector<8x64xf32> -> vector<8x64xf32>
    %c0_58 = arith.constant 0 : index
    %c0_59 = arith.constant 0 : index
    %195 = vector.load %arg14[%c0_58, %c0_59] : memref<64x256xf32, #tpu.memory_space<vmem>>, vector<64x256xf32>
    %cst_60 = arith.constant dense<0.000000e+00> : vector<8x256xf32>
    %196 = tpu.matmul %194, %195, %cst_60 {dimension_numbers = #tpu.dot_dimension_numbers<[1], [0], [0], [1], [0, 0, 1, 1], [], []>} : vector<8x64xf32>, vector<64x256xf32>, vector<8x256xf32> -> vector<8x256xf32>
    %197 = arith.addf %196, %163 : vector<8x256xf32>
    %198 = vector.extract_strided_slice %4 {offsets = [1, 0, 0], sizes = [1, 8, 1], strides = [1, 1, 1]} : vector<3x8x1xf32> to vector<1x8x1xf32>
    %199 = vector.shape_cast %198 : vector<1x8x1xf32> to vector<8x1xf32>
    %200 = vector.extract_strided_slice %5 {offsets = [1, 0, 0], sizes = [1, 8, 1], strides = [1, 1, 1]} : vector<3x8x1xf32> to vector<1x8x1xf32>
    %201 = vector.shape_cast %200 : vector<1x8x1xf32> to vector<8x1xf32>
    %202 = vector.broadcast %199 : vector<8x1xf32> to vector<8x256xf32>
    %203 = arith.mulf %197, %202 : vector<8x256xf32>
    %204 = vector.broadcast %201 : vector<8x1xf32> to vector<8x256xf32>
    %205 = arith.addf %203, %204 : vector<8x256xf32>
    %cst_61 = arith.constant 0.000000e+00 : f32
    %206 = vector.broadcast %cst_61 : f32 to vector<8x256xf32>
    %207 = arith.maximumf %205, %206 : vector<8x256xf32>
    %c17_i32_62 = arith.constant 17 : i32
    %208 = tpu.dynamic_rotate %207 by %c17_i32_62 dim 1 : vector<8x256xf32>, i32 -> vector<8x256xf32>
    %209 = vector.extract_strided_slice %12 {offsets = [0, 0], sizes = [1, 256], strides = [1, 1]} : vector<9x256xf32> to vector<1x256xf32>
    %210 = vector.broadcast %209 : vector<1x256xf32> to vector<8x256xf32>
    %211 = arith.mulf %208, %210 : vector<8x256xf32>
    %c16_i32_63 = arith.constant 16 : i32
    %212 = tpu.dynamic_rotate %207 by %c16_i32_63 dim 1 : vector<8x256xf32>, i32 -> vector<8x256xf32>
    %213 = vector.extract_strided_slice %12 {offsets = [1, 0], sizes = [1, 256], strides = [1, 1]} : vector<9x256xf32> to vector<1x256xf32>
    %214 = vector.broadcast %213 : vector<1x256xf32> to vector<8x256xf32>
    %215 = arith.mulf %212, %214 : vector<8x256xf32>
    %c15_i32_64 = arith.constant 15 : i32
    %216 = tpu.dynamic_rotate %207 by %c15_i32_64 dim 1 : vector<8x256xf32>, i32 -> vector<8x256xf32>
    %217 = vector.extract_strided_slice %12 {offsets = [2, 0], sizes = [1, 256], strides = [1, 1]} : vector<9x256xf32> to vector<1x256xf32>
    %218 = vector.broadcast %217 : vector<1x256xf32> to vector<8x256xf32>
    %219 = arith.mulf %216, %218 : vector<8x256xf32>
    %c1_i32_65 = arith.constant 1 : i32
    %220 = tpu.dynamic_rotate %207 by %c1_i32_65 dim 1 : vector<8x256xf32>, i32 -> vector<8x256xf32>
    %221 = vector.extract_strided_slice %12 {offsets = [3, 0], sizes = [1, 256], strides = [1, 1]} : vector<9x256xf32> to vector<1x256xf32>
    %222 = vector.broadcast %221 : vector<1x256xf32> to vector<8x256xf32>
    %223 = arith.mulf %220, %222 : vector<8x256xf32>
    %224 = vector.extract_strided_slice %12 {offsets = [4, 0], sizes = [1, 256], strides = [1, 1]} : vector<9x256xf32> to vector<1x256xf32>
    %225 = vector.broadcast %224 : vector<1x256xf32> to vector<8x256xf32>
    %226 = arith.mulf %207, %225 : vector<8x256xf32>
    %c255_i32_66 = arith.constant 255 : i32
    %227 = tpu.dynamic_rotate %207 by %c255_i32_66 dim 1 : vector<8x256xf32>, i32 -> vector<8x256xf32>
    %228 = vector.extract_strided_slice %12 {offsets = [5, 0], sizes = [1, 256], strides = [1, 1]} : vector<9x256xf32> to vector<1x256xf32>
    %229 = vector.broadcast %228 : vector<1x256xf32> to vector<8x256xf32>
    %230 = arith.mulf %227, %229 : vector<8x256xf32>
    %c241_i32_67 = arith.constant 241 : i32
    %231 = tpu.dynamic_rotate %207 by %c241_i32_67 dim 1 : vector<8x256xf32>, i32 -> vector<8x256xf32>
    %232 = vector.extract_strided_slice %12 {offsets = [6, 0], sizes = [1, 256], strides = [1, 1]} : vector<9x256xf32> to vector<1x256xf32>
    %233 = vector.broadcast %232 : vector<1x256xf32> to vector<8x256xf32>
    %234 = arith.mulf %231, %233 : vector<8x256xf32>
    %c240_i32_68 = arith.constant 240 : i32
    %235 = tpu.dynamic_rotate %207 by %c240_i32_68 dim 1 : vector<8x256xf32>, i32 -> vector<8x256xf32>
    %236 = vector.extract_strided_slice %12 {offsets = [7, 0], sizes = [1, 256], strides = [1, 1]} : vector<9x256xf32> to vector<1x256xf32>
    %237 = vector.broadcast %236 : vector<1x256xf32> to vector<8x256xf32>
    %238 = arith.mulf %235, %237 : vector<8x256xf32>
    %c239_i32_69 = arith.constant 239 : i32
    %239 = tpu.dynamic_rotate %207 by %c239_i32_69 dim 1 : vector<8x256xf32>, i32 -> vector<8x256xf32>
    %240 = vector.extract_strided_slice %12 {offsets = [8, 0], sizes = [1, 256], strides = [1, 1]} : vector<9x256xf32> to vector<1x256xf32>
    %241 = vector.broadcast %240 : vector<1x256xf32> to vector<8x256xf32>
    %242 = arith.mulf %239, %241 : vector<8x256xf32>
    %243 = tpu.concatenate %211, %215, %219, %223, %226, %230, %234, %238, %242 in 0 : vector<8x256xf32>, vector<8x256xf32>, vector<8x256xf32>, vector<8x256xf32>, vector<8x256xf32>, vector<8x256xf32>, vector<8x256xf32>, vector<8x256xf32>, vector<8x256xf32> -> vector<72x256xf32>
    %244 = arith.truncf %243 : vector<72x256xf32> to vector<72x256xbf16>
    %245 = vector.extract_strided_slice %11 {offsets = [1, 0, 0], sizes = [1, 8, 72], strides = [1, 1, 1]} : vector<3x8x72xbf16> to vector<1x8x72xbf16>
    %246 = vector.shape_cast %245 : vector<1x8x72xbf16> to vector<8x72xbf16>
    %cst_70 = arith.constant dense<0.000000e+00> : vector<8x256xf32>
    %247 = tpu.matmul %246, %244, %cst_70 {dimension_numbers = #tpu.dot_dimension_numbers<[1], [0], [0], [1], [0, 0, 1, 1], [], []>} : vector<8x72xbf16>, vector<72x256xbf16>, vector<8x256xf32> -> vector<8x256xf32>
    %248 = vector.extract_strided_slice %6 {offsets = [2, 0, 0], sizes = [1, 8, 1], strides = [1, 1, 1]} : vector<4x8x1xf32> to vector<1x8x1xf32>
    %249 = vector.shape_cast %248 : vector<1x8x1xf32> to vector<8x1xf32>
    %250 = vector.extract_strided_slice %7 {offsets = [2, 0, 0], sizes = [1, 8, 1], strides = [1, 1, 1]} : vector<4x8x1xf32> to vector<1x8x1xf32>
    %251 = vector.shape_cast %250 : vector<1x8x1xf32> to vector<8x1xf32>
    %252 = vector.broadcast %249 : vector<8x1xf32> to vector<8x256xf32>
    %253 = arith.mulf %247, %252 : vector<8x256xf32>
    %254 = vector.broadcast %251 : vector<8x1xf32> to vector<8x256xf32>
    %255 = arith.addf %253, %254 : vector<8x256xf32>
    %cst_71 = arith.constant 0.000000e+00 : f32
    %256 = vector.broadcast %cst_71 : f32 to vector<8x256xf32>
    %257 = arith.maximumf %255, %256 : vector<8x256xf32>
    %258 = arith.truncf %257 : vector<8x256xf32> to vector<8x256xbf16>
    %259 = vector.extract_strided_slice %10 {offsets = [2, 0, 0], sizes = [1, 16, 8], strides = [1, 1, 1]} : vector<4x16x8xbf16> to vector<1x16x8xbf16>
    %260 = vector.shape_cast %259 : vector<1x16x8xbf16> to vector<16x8xbf16>
    %cst_72 = arith.constant dense<0.000000e+00> : vector<16x256xf32>
    %261 = tpu.matmul %260, %258, %cst_72 {dimension_numbers = #tpu.dot_dimension_numbers<[1], [0], [0], [1], [0, 0, 1, 1], [], []>} : vector<16x8xbf16>, vector<8x256xbf16>, vector<16x256xf32> -> vector<16x256xf32>
    %262 = arith.addf %178, %261 : vector<16x256xf32>
    %cst_73 = arith.constant dense<0.000000e+00> : vector<16xf32>
    %263 = vector.multi_reduction <add>, %1, %cst_73 [1] : vector<16x256xf32> to vector<16xf32>
    %264 = vector.shape_cast %263 : vector<16xf32> to vector<16x1xf32>
    %cst_74 = arith.constant 3.906250e-03 : f32
    %265 = vector.broadcast %cst_74 : f32 to vector<16x1xf32>
    %266 = arith.mulf %264, %265 : vector<16x1xf32>
    %267 = vector.extract_strided_slice %2 {offsets = [3, 0, 0], sizes = [1, 16, 1], strides = [1, 1, 1]} : vector<5x16x1xf32> to vector<1x16x1xf32>
    %268 = vector.shape_cast %267 : vector<1x16x1xf32> to vector<16x1xf32>
    %269 = vector.extract_strided_slice %3 {offsets = [3, 0, 0], sizes = [1, 16, 1], strides = [1, 1, 1]} : vector<5x16x1xf32> to vector<1x16x1xf32>
    %270 = vector.shape_cast %269 : vector<1x16x1xf32> to vector<16x1xf32>
    %271 = arith.mulf %266, %268 : vector<16x1xf32>
    %272 = arith.addf %271, %270 : vector<16x1xf32>
    %cst_75 = arith.constant 0.000000e+00 : f32
    %273 = vector.broadcast %cst_75 : f32 to vector<16x1xf32>
    %274 = arith.maximumf %272, %273 : vector<16x1xf32>
    %275 = arith.truncf %274 : vector<16x1xf32> to vector<16x1xbf16>
    %276 = vector.extract_strided_slice %8 {offsets = [3, 0, 0], sizes = [1, 8, 16], strides = [1, 1, 1]} : vector<4x8x16xbf16> to vector<1x8x16xbf16>
    %277 = vector.shape_cast %276 : vector<1x8x16xbf16> to vector<8x16xbf16>
    %cst_76 = arith.constant dense<0.000000e+00> : vector<8x1xf32>
    %278 = tpu.matmul %277, %275, %cst_76 {dimension_numbers = #tpu.dot_dimension_numbers<[1], [0], [0], [1], [0, 0, 1, 1], [], []>} : vector<8x16xbf16>, vector<16x1xbf16>, vector<8x1xf32> -> vector<8x1xf32>
    %279 = vector.shape_cast %278 : vector<8x1xf32> to vector<8x1xf32>
    %280 = vector.broadcast %279 : vector<8x1xf32> to vector<8x256xf32>
    %281 = arith.addf %280, %247 : vector<8x256xf32>
    %282 = vector.extract_strided_slice %4 {offsets = [2, 0, 0], sizes = [1, 8, 1], strides = [1, 1, 1]} : vector<3x8x1xf32> to vector<1x8x1xf32>
    %283 = vector.shape_cast %282 : vector<1x8x1xf32> to vector<8x1xf32>
    %284 = vector.extract_strided_slice %5 {offsets = [2, 0, 0], sizes = [1, 8, 1], strides = [1, 1, 1]} : vector<3x8x1xf32> to vector<1x8x1xf32>
    %285 = vector.shape_cast %284 : vector<1x8x1xf32> to vector<8x1xf32>
    %286 = vector.broadcast %283 : vector<8x1xf32> to vector<8x256xf32>
    %287 = arith.mulf %281, %286 : vector<8x256xf32>
    %288 = vector.broadcast %285 : vector<8x1xf32> to vector<8x256xf32>
    %289 = arith.addf %287, %288 : vector<8x256xf32>
    %cst_77 = arith.constant 0.000000e+00 : f32
    %290 = vector.broadcast %cst_77 : f32 to vector<8x256xf32>
    %291 = arith.maximumf %289, %290 : vector<8x256xf32>
    %c17_i32_78 = arith.constant 17 : i32
    %292 = tpu.dynamic_rotate %291 by %c17_i32_78 dim 1 : vector<8x256xf32>, i32 -> vector<8x256xf32>
    %293 = vector.extract_strided_slice %12 {offsets = [0, 0], sizes = [1, 256], strides = [1, 1]} : vector<9x256xf32> to vector<1x256xf32>
    %294 = vector.broadcast %293 : vector<1x256xf32> to vector<8x256xf32>
    %295 = arith.mulf %292, %294 : vector<8x256xf32>
    %c16_i32_79 = arith.constant 16 : i32
    %296 = tpu.dynamic_rotate %291 by %c16_i32_79 dim 1 : vector<8x256xf32>, i32 -> vector<8x256xf32>
    %297 = vector.extract_strided_slice %12 {offsets = [1, 0], sizes = [1, 256], strides = [1, 1]} : vector<9x256xf32> to vector<1x256xf32>
    %298 = vector.broadcast %297 : vector<1x256xf32> to vector<8x256xf32>
    %299 = arith.mulf %296, %298 : vector<8x256xf32>
    %c15_i32_80 = arith.constant 15 : i32
    %300 = tpu.dynamic_rotate %291 by %c15_i32_80 dim 1 : vector<8x256xf32>, i32 -> vector<8x256xf32>
    %301 = vector.extract_strided_slice %12 {offsets = [2, 0], sizes = [1, 256], strides = [1, 1]} : vector<9x256xf32> to vector<1x256xf32>
    %302 = vector.broadcast %301 : vector<1x256xf32> to vector<8x256xf32>
    %303 = arith.mulf %300, %302 : vector<8x256xf32>
    %c1_i32_81 = arith.constant 1 : i32
    %304 = tpu.dynamic_rotate %291 by %c1_i32_81 dim 1 : vector<8x256xf32>, i32 -> vector<8x256xf32>
    %305 = vector.extract_strided_slice %12 {offsets = [3, 0], sizes = [1, 256], strides = [1, 1]} : vector<9x256xf32> to vector<1x256xf32>
    %306 = vector.broadcast %305 : vector<1x256xf32> to vector<8x256xf32>
    %307 = arith.mulf %304, %306 : vector<8x256xf32>
    %308 = vector.extract_strided_slice %12 {offsets = [4, 0], sizes = [1, 256], strides = [1, 1]} : vector<9x256xf32> to vector<1x256xf32>
    %309 = vector.broadcast %308 : vector<1x256xf32> to vector<8x256xf32>
    %310 = arith.mulf %291, %309 : vector<8x256xf32>
    %c255_i32_82 = arith.constant 255 : i32
    %311 = tpu.dynamic_rotate %291 by %c255_i32_82 dim 1 : vector<8x256xf32>, i32 -> vector<8x256xf32>
    %312 = vector.extract_strided_slice %12 {offsets = [5, 0], sizes = [1, 256], strides = [1, 1]} : vector<9x256xf32> to vector<1x256xf32>
    %313 = vector.broadcast %312 : vector<1x256xf32> to vector<8x256xf32>
    %314 = arith.mulf %311, %313 : vector<8x256xf32>
    %c241_i32_83 = arith.constant 241 : i32
    %315 = tpu.dynamic_rotate %291 by %c241_i32_83 dim 1 : vector<8x256xf32>, i32 -> vector<8x256xf32>
    %316 = vector.extract_strided_slice %12 {offsets = [6, 0], sizes = [1, 256], strides = [1, 1]} : vector<9x256xf32> to vector<1x256xf32>
    %317 = vector.broadcast %316 : vector<1x256xf32> to vector<8x256xf32>
    %318 = arith.mulf %315, %317 : vector<8x256xf32>
    %c240_i32_84 = arith.constant 240 : i32
    %319 = tpu.dynamic_rotate %291 by %c240_i32_84 dim 1 : vector<8x256xf32>, i32 -> vector<8x256xf32>
    %320 = vector.extract_strided_slice %12 {offsets = [7, 0], sizes = [1, 256], strides = [1, 1]} : vector<9x256xf32> to vector<1x256xf32>
    %321 = vector.broadcast %320 : vector<1x256xf32> to vector<8x256xf32>
    %322 = arith.mulf %319, %321 : vector<8x256xf32>
    %c239_i32_85 = arith.constant 239 : i32
    %323 = tpu.dynamic_rotate %291 by %c239_i32_85 dim 1 : vector<8x256xf32>, i32 -> vector<8x256xf32>
    %324 = vector.extract_strided_slice %12 {offsets = [8, 0], sizes = [1, 256], strides = [1, 1]} : vector<9x256xf32> to vector<1x256xf32>
    %325 = vector.broadcast %324 : vector<1x256xf32> to vector<8x256xf32>
    %326 = arith.mulf %323, %325 : vector<8x256xf32>
    %327 = tpu.concatenate %295, %299, %303, %307, %310, %314, %318, %322, %326 in 0 : vector<8x256xf32>, vector<8x256xf32>, vector<8x256xf32>, vector<8x256xf32>, vector<8x256xf32>, vector<8x256xf32>, vector<8x256xf32>, vector<8x256xf32>, vector<8x256xf32> -> vector<72x256xf32>
    %328 = arith.truncf %327 : vector<72x256xf32> to vector<72x256xbf16>
    %329 = vector.extract_strided_slice %11 {offsets = [2, 0, 0], sizes = [1, 8, 72], strides = [1, 1, 1]} : vector<3x8x72xbf16> to vector<1x8x72xbf16>
    %330 = vector.shape_cast %329 : vector<1x8x72xbf16> to vector<8x72xbf16>
    %cst_86 = arith.constant dense<0.000000e+00> : vector<8x256xf32>
    %331 = tpu.matmul %330, %328, %cst_86 {dimension_numbers = #tpu.dot_dimension_numbers<[1], [0], [0], [1], [0, 0, 1, 1], [], []>} : vector<8x72xbf16>, vector<72x256xbf16>, vector<8x256xf32> -> vector<8x256xf32>
    %332 = vector.extract_strided_slice %6 {offsets = [3, 0, 0], sizes = [1, 8, 1], strides = [1, 1, 1]} : vector<4x8x1xf32> to vector<1x8x1xf32>
    %333 = vector.shape_cast %332 : vector<1x8x1xf32> to vector<8x1xf32>
    %334 = vector.extract_strided_slice %7 {offsets = [3, 0, 0], sizes = [1, 8, 1], strides = [1, 1, 1]} : vector<4x8x1xf32> to vector<1x8x1xf32>
    %335 = vector.shape_cast %334 : vector<1x8x1xf32> to vector<8x1xf32>
    %336 = vector.broadcast %333 : vector<8x1xf32> to vector<8x256xf32>
    %337 = arith.mulf %331, %336 : vector<8x256xf32>
    %338 = vector.broadcast %335 : vector<8x1xf32> to vector<8x256xf32>
    %339 = arith.addf %337, %338 : vector<8x256xf32>
    %cst_87 = arith.constant 0.000000e+00 : f32
    %340 = vector.broadcast %cst_87 : f32 to vector<8x256xf32>
    %341 = arith.maximumf %339, %340 : vector<8x256xf32>
    %342 = arith.truncf %341 : vector<8x256xf32> to vector<8x256xbf16>
    %343 = vector.extract_strided_slice %10 {offsets = [3, 0, 0], sizes = [1, 16, 8], strides = [1, 1, 1]} : vector<4x16x8xbf16> to vector<1x16x8xbf16>
    %344 = vector.shape_cast %343 : vector<1x16x8xbf16> to vector<16x8xbf16>
    %cst_88 = arith.constant dense<0.000000e+00> : vector<16x256xf32>
    %345 = tpu.matmul %344, %342, %cst_88 {dimension_numbers = #tpu.dot_dimension_numbers<[1], [0], [0], [1], [0, 0, 1, 1], [], []>} : vector<16x8xbf16>, vector<8x256xbf16>, vector<16x256xf32> -> vector<16x256xf32>
    %346 = arith.addf %262, %345 : vector<16x256xf32>
    %347 = vector.shape_cast %346 : vector<16x256xf32> to vector<1x16x256xf32>
    %c0_89 = arith.constant 0 : index
    %c0_90 = arith.constant 0 : index
    %c0_91 = arith.constant 0 : index
    %348 = vector.load %arg15[%c0_89, %c0_90, %c0_91] : memref<1x16x256xf32, #tpu.memory_space<vmem>>, vector<1x16x256xf32>
    tpu.vector_store %arg15[%c0_89, %c0_90, %c0_91], %347 {strides = array<i32>} : memref<1x16x256xf32, #tpu.memory_space<vmem>>, vector<1x16x256xf32>,
    return
  }
  func.func @transform_0(%arg0: i32) -> (i32, i32, i32) {
    %c0_i32 = arith.constant 0 : i32
    %c0_i32_0 = arith.constant 0 : i32
    %c0_i32_1 = arith.constant 0 : i32
    return %arg0, %c0_i32, %c0_i32_0 : i32, i32, i32
  }
  func.func @transform_1(%arg0: i32) -> (i32, i32, i32) {
    %c0_i32 = arith.constant 0 : i32
    %c0_i32_0 = arith.constant 0 : i32
    %c0_i32_1 = arith.constant 0 : i32
    %c0_i32_2 = arith.constant 0 : i32
    return %c0_i32, %c0_i32_0, %c0_i32_1 : i32, i32, i32
  }
  func.func @transform_2(%arg0: i32) -> (i32, i32, i32) {
    %c0_i32 = arith.constant 0 : i32
    %c0_i32_0 = arith.constant 0 : i32
    %c0_i32_1 = arith.constant 0 : i32
    %c0_i32_2 = arith.constant 0 : i32
    return %c0_i32, %c0_i32_0, %c0_i32_1 : i32, i32, i32
  }
  func.func @transform_3(%arg0: i32) -> (i32, i32, i32) {
    %c0_i32 = arith.constant 0 : i32
    %c0_i32_0 = arith.constant 0 : i32
    %c0_i32_1 = arith.constant 0 : i32
    %c0_i32_2 = arith.constant 0 : i32
    return %c0_i32, %c0_i32_0, %c0_i32_1 : i32, i32, i32
  }
  func.func @transform_4(%arg0: i32) -> (i32, i32, i32) {
    %c0_i32 = arith.constant 0 : i32
    %c0_i32_0 = arith.constant 0 : i32
    %c0_i32_1 = arith.constant 0 : i32
    %c0_i32_2 = arith.constant 0 : i32
    return %c0_i32, %c0_i32_0, %c0_i32_1 : i32, i32, i32
  }
  func.func @transform_5(%arg0: i32) -> (i32, i32, i32) {
    %c0_i32 = arith.constant 0 : i32
    %c0_i32_0 = arith.constant 0 : i32
    %c0_i32_1 = arith.constant 0 : i32
    %c0_i32_2 = arith.constant 0 : i32
    return %c0_i32, %c0_i32_0, %c0_i32_1 : i32, i32, i32
  }
  func.func @transform_6(%arg0: i32) -> (i32, i32, i32) {
    %c0_i32 = arith.constant 0 : i32
    %c0_i32_0 = arith.constant 0 : i32
    %c0_i32_1 = arith.constant 0 : i32
    %c0_i32_2 = arith.constant 0 : i32
    return %c0_i32, %c0_i32_0, %c0_i32_1 : i32, i32, i32
  }
  func.func @transform_7(%arg0: i32) -> (i32, i32, i32) {
    %c0_i32 = arith.constant 0 : i32
    %c0_i32_0 = arith.constant 0 : i32
    %c0_i32_1 = arith.constant 0 : i32
    %c0_i32_2 = arith.constant 0 : i32
    return %c0_i32, %c0_i32_0, %c0_i32_1 : i32, i32, i32
  }
  func.func @transform_8(%arg0: i32) -> (i32, i32) {
    %c0_i32 = arith.constant 0 : i32
    %c0_i32_0 = arith.constant 0 : i32
    %c0_i32_1 = arith.constant 0 : i32
    return %c0_i32, %c0_i32_0 : i32, i32
  }
  func.func @transform_9(%arg0: i32) -> (i32, i32, i32) {
    %c0_i32 = arith.constant 0 : i32
    %c0_i32_0 = arith.constant 0 : i32
    %c0_i32_1 = arith.constant 0 : i32
    %c0_i32_2 = arith.constant 0 : i32
    return %c0_i32, %c0_i32_0, %c0_i32_1 : i32, i32, i32
  }
  func.func @transform_10(%arg0: i32) -> (i32, i32, i32) {
    %c0_i32 = arith.constant 0 : i32
    %c0_i32_0 = arith.constant 0 : i32
    %c0_i32_1 = arith.constant 0 : i32
    %c0_i32_2 = arith.constant 0 : i32
    return %c0_i32, %c0_i32_0, %c0_i32_1 : i32, i32, i32
  }
  func.func @transform_11(%arg0: i32) -> (i32, i32) {
    %c0_i32 = arith.constant 0 : i32
    %c0_i32_0 = arith.constant 0 : i32
    %c0_i32_1 = arith.constant 0 : i32
    return %c0_i32, %c0_i32_0 : i32, i32
  }
  func.func @transform_12(%arg0: i32) -> (i32, i32) {
    %c0_i32 = arith.constant 0 : i32
    %c0_i32_0 = arith.constant 0 : i32
    %c0_i32_1 = arith.constant 0 : i32
    return %c0_i32, %c0_i32_0 : i32, i32
  }
  func.func @transform_13(%arg0: i32) -> (i32, i32) {
    %c0_i32 = arith.constant 0 : i32
    %c0_i32_0 = arith.constant 0 : i32
    %c0_i32_1 = arith.constant 0 : i32
    return %c0_i32, %c0_i32_0 : i32, i32
  }
  func.func @transform_14(%arg0: i32) -> (i32, i32, i32) {
    %c0_i32 = arith.constant 0 : i32
    %c0_i32_0 = arith.constant 0 : i32
    %c0_i32_1 = arith.constant 0 : i32
    return %arg0, %c0_i32, %c0_i32_0 : i32, i32, i32
  }
}

</mosaic_0001>

<bundles_post_ra>
// kernel: forward.1
= control target key start
LH: loop header
LB: loop body
LE: loop exit
PB: predicated region body
PF: predicated region fallthrough
CT: control target
= control target key end

     0   :  { %s3545_s0 = inlined_call_operand.vmem [shape: f32[2,16,256], index: 0, kind: input, shape index: {}]   ;;  %s3546_s1 = inlined_call_operand.vmem [shape: f32[5,16,1], index: 1, kind: input, shape index: {}]   ;;  %s3547_s2 = inlined_call_operand.vmem [shape: f32[5,16,1], index: 2, kind: input, shape index: {}]   ;;  %s3548_s3 = inlined_call_operand.hbm [shape: f32[3,8,1], index: 3, kind: input, shape index: {}]   ;;  %s3549_s4 = inlined_call_operand.hbm [shape: f32[3,8,1], index: 4, kind: input, shape index: {}]   ;;  %s3550_s5 = inlined_call_operand.hbm [shape: f32[4,8,1], index: 5, kind: input, shape index: {}]   ;;  %s3551_s6 = inlined_call_operand.hbm [shape: f32[4,8,1], index: 6, kind: input, shape index: {}]   ;;  %s3552_s7 = inlined_call_operand.hbm [shape: bf16[4,8,16], index: 7, kind: input, shape index: {}]   ;;  %s3553_s8 = inlined_call_operand.hbm [shape: bf16[16,16], index: 8, kind: input, shape index: {}]   ;;  %s3554_s9 = inlined_call_operand.hbm [shape: bf16[4,16,8], index: 9, kind: input, shape index: {}]   ;;  %s3555_s10 = inlined_call_operand.hbm [shape: bf16[3,8,72], index: 10, kind: input, shape index: {}]   ;;  %s3556_s11 = inlined_call_operand.vmem [shape: f32[9,256], index: 11, kind: input, shape index: {}]   ;;  %s3557_s12 = inlined_call_operand.vmem [shape: f32[256,64], index: 12, kind: input, shape index: {}]   ;;  %s3558_s13 = inlined_call_operand.vmem [shape: f32[64,256], index: 13, kind: input, shape index: {}]   ;;  %s3559_s14 = inlined_call_operand.vmem [shape: f32[2,16,256], index: 14, kind: output, shape index: {}]  }
   0x1   :  { %3562 = sst [smem:[#allocation21_spill]] %s3548_s3 }
   0x2   :  { %3563 = sst [smem:[#allocation22_spill]] %s3549_s4 }
   0x3   :  { %3564 = sst [smem:[#allocation23_spill]] %s3551_s6 }
   0x4   :  { %3565 = sst [smem:[#allocation24_spill]] %s3559_s14 }
   0x5   :  { %19 = vsyncpa [#allocation3], 0 }
   0x6   :  { %20 = vsyncpa [#allocation5], 0 }
   0x7   :  { %21 = vsyncpa [#allocation8], 0 }
   0x8   :  { %22 = vsyncpa [#allocation11], 0 }
   0x9   :  { %23 = vsyncpa [#allocation14], 0  ;;  %s2602_s29 = smov 0  }
   0xa LB: > { %3566 = sst [smem:[#allocation20_spill]] %s2504_s29  ;;  %s2608_s30 = sadd.s32 4294967295, %s2504_s29   ;;  %s2504_s29 = sphi %s2602_s29, %s29_s29  }
   0xb   : > { %p2049_p0 = scmp.ge.s32.totalorder %s2504_s29, 1  ;;  %p359_p1 = scmp.lt.s32.totalorder %s2504_s29, 3 }
   0xc   : > { %p2182_p2 = scmp.eq.s32.totalorder %s2608_s30, 0  ;;  %s3567_s4 = sld [smem:[#allocation22_spill]] }
   0xd   : > { %p2616_p3 = pnand %p2049_p0, %p359_p1  ;;  %s3569_s6 = sld [smem:[#allocation23_spill]] }
   0xe   : > { %s2506_s22 = smov [#allocation4]   ;;  %s2507_s25 = smov [#allocation7]  }
   0xf   : > { %p2157_p4 = pneg %p2616_p3  ;;  %s392_s23 = sshll.u32 %s2506_s22, 4  ;;  %s393_s23 = int_to_ptr.vmem [resolvable:$true] %s392_s23 }
  0x10   : > { %s420_s26 = sshll.u32 %s2507_s25, 4  ;;  %s2508_s27 = smov 128   ;;  %s421_s26 = int_to_ptr.vmem [resolvable:$true] %s420_s26 }
  0x11   : > { %p2627_p5 = pnand %p2182_p2, %p2157_p4  ;;  %s2509_s28 = smov 8  }
  0x12   : > { %s390_s17 = sshll.u32 %s3567_s4, 4  ;;  %s446_s19 = sshll.u32 %s3553_s8, 4  ;;  %s391_s17 = int_to_ptr.hbm [resolvable:$true] %s390_s17  ;;  %s447_s19 = int_to_ptr.hbm [resolvable:$true] %s446_s19 }
  0x13   : > { %s418_s21 = sshll.u32 %s3569_s6, 4  ;;  %s2510_s20 = smov [#allocation10]   ;;  %s419_s21 = int_to_ptr.hbm [resolvable:$true] %s418_s21 }
  0x14   : > { %2163 = dma.hbm_to_vmem [thread:$0]  (!%p2627_p5), %s391_s17, 384, %s393_s23, [#allocation5], %s2508_s27, %s2508_s27, %s2509_s28  }
  0x15   : > { %2169 = dma.hbm_to_vmem [thread:$0]  (!%p2627_p5), %s419_s21, 512, %s421_s26, [#allocation8], %s2508_s27, %s2508_s27, %s2509_s28  }
  0x16   : > { %s448_s22 = sshll.u32 %s2510_s20, 4  ;;  %s3571_s3 = sld [smem:[#allocation21_spill]]  ;;  %s449_s22 = int_to_ptr.vmem [resolvable:$true] %s448_s22 }
  0x17   : > { %s2511_s25 = smov 64   ;;  %s2512_s14 = smov 4  }
  0x18   : > { %2175 = dma.hbm_to_vmem [thread:$0]  (!%p2627_p5), %s447_s19, 128, %s449_s22, [#allocation11], %s2511_s25, %s2511_s25, %s2512_s14  }
  0x19   : > { %s404_s23 = sshll.u32 %s3550_s5, 4  ;;  %s2513_s26 = smov [#allocation2]   ;;  %s405_s23 = int_to_ptr.hbm [resolvable:$true] %s404_s23 }
  0x1a   : > { %s378_s15 = sshll.u32 %s2513_s26, 4  ;;  %s2514_s4 = smov [#allocation6]   ;;  %s379_s15 = int_to_ptr.vmem [resolvable:$true] %s378_s15 }
  0x1b   : > { %s406_s6 = sshll.u32 %s2514_s4, 4  ;;  %s460_s17 = sshll.u32 %s3554_s9, 4  ;;  %s407_s6 = int_to_ptr.vmem [resolvable:$true] %s406_s6  ;;  %s461_s17 = int_to_ptr.hbm [resolvable:$true] %s460_s17 }
  0x1c   : > { %s376_s29 = sshll.u32 %s3571_s3, 4  ;;  %s432_s3 = sshll.u32 %s3552_s7, 4  ;;  %s377_s29 = int_to_ptr.hbm [resolvable:$true] %s376_s29  ;;  %s433_s3 = int_to_ptr.hbm [resolvable:$true] %s432_s3 }
  0x1d   : > { %2160 = dma.hbm_to_vmem [thread:$0]  (!%p2627_p5), %s377_s29, 384, %s379_s15, [#allocation3], %s2508_s27, %s2508_s27, %s2509_s28  }
  0x1e   : > { %2166 = dma.hbm_to_vmem [thread:$0]  (!%p2627_p5), %s405_s23, 512, %s407_s6, [#allocation5], %s2508_s27, %s2508_s27, %s2509_s28  }
  0x1f   : > { %s2515_s21 = smov [#allocation9]   ;;  %s2516_s29 = smov [#allocation12]  }
  0x20   : > { %s434_s26 = sshll.u32 %s2515_s21, 4  ;;  %s462_s15 = sshll.u32 %s2516_s29, 4  ;;  %s435_s26 = int_to_ptr.vmem [resolvable:$true] %s434_s26  ;;  %s463_s15 = int_to_ptr.vmem [resolvable:$true] %s462_s15 }
  0x21   : > { %2172 = dma.hbm_to_vmem [thread:$0]  (!%p2627_p5), %s433_s3, 256, %s435_s26, [#allocation8], %s2511_s25, %s2511_s25, %s2512_s14  }
  0x22   : > { %s474_s27 = sshll.u32 %s3555_s10, 4  ;;  %s2517_s28 = smov [#allocation13]   ;;  %s475_s27 = int_to_ptr.hbm [resolvable:$true] %s474_s27 }
  0x23   : > { %2178 = dma.hbm_to_vmem [thread:$0]  (!%p2627_p5), %s461_s17, 512, %s463_s15, [#allocation11], %s2511_s25, %s2511_s25, %s2512_s14  }
  0x24   : > { %s476_s23 = sshll.u32 %s2517_s28, 4  ;;  %509 = sbr.rel (%p2616_p3) target bundleno = 2125 (0x84d), region = 76  ;;  %s477_s23 = int_to_ptr.vmem [resolvable:$true] %s476_s23 }
  0x25   : > { %2181 = dma.hbm_to_vmem [thread:$0]  (!%p2627_p5), %s475_s27, 192, %s477_s23, [#allocation14], %s2511_s25, %s2511_s25, %s2512_s14  }
  0x29   : > { %2483 = dma.done.wait (%p2182_p2), [#allocation3], 384  }
  0x2a   : > { %2485 = vsyncadd (%p2182_p2), [#allocation3], 4294966912 }
  0x2b   : > { %2487 = dma.done.wait (%p2182_p2), [#allocation5], 896  }
  0x2c   : > { %2489 = vsyncadd (%p2182_p2), [#allocation5], 4294966400 }
  0x2d   : > { %2491 = dma.done.wait (%p2182_p2), [#allocation8], 768  }
  0x2e   : > { %2493 = vsyncadd (%p2182_p2), [#allocation8], 4294966528 }
  0x2f   : > { %2495 = dma.done.wait (%p2182_p2), [#allocation11], 640  }
  0x30   : > { %2497 = vsyncadd (%p2182_p2), [#allocation11], 4294966656 }
  0x31   : > { %2499 = dma.done.wait (%p2182_p2), [#allocation14], 192  }
  0x32   : > { %2501 = vsyncadd (%p2182_p2), [#allocation14], 4294967104  ;;  %p591_p6 = scmp.lt.s32.totalorder %s2608_s30, 1  ;;  %v2518_v0 = vmov 0   ;;  %v616_v1 = vld [vmem:[%s3547_s2] sm:$0xff]  ;;  %s2519_s22 = smov 17   ;;  %v865_v29 = vlaneseq }
  0x33   : > { %2228 = vset.pattern.permute.xlu1 %v2518_v0  ;;  %2227 = vset.pattern.permute.xlu0 %v2518_v0  ;;  %v606_v2 = vld [vmem:[%s3546_s1] sm:$0xff]  ;;  %v617_v4 = vld [vmem:[%s3547_s2 + $0x8] sm:$0xff]  ;;  %s2520_s15 = smov 16   ;;  %s2521_s4 = smov 15   ;;  %v632_v9 = vld [vmem:[#allocation6] sm:$0xff]  ;;  %vm729_vm1 = vcmask 130048  }
  0x34   : > { %s3576_s30 = smov (!%p591_p6, %s2608_s30), 1  ;;  %2229 = vset.pattern.permute.xlu2 %v2518_v0  ;;  %711 = vperm.xlu1 %2228, %v616_v1   ;;  %v607_v5 = vld [vmem:[%s3546_s1 + $0x8] sm:$0xff]  ;;  %s2522_s16 = smov 1   ;;  %v636_v10 = vld [vmem:[#allocation7] sm:$0xff]  ;;  %v609_v15 = vld [vmem:[%s3546_s1 + $0x18] sm:$0xff]  ;;  %v2829_v36 = vand.u32 127, %v865_v29 }
  0x35   : > { %s3561_s3 = sshll.u32 %s3576_s30, 5  ;;  %697 = vperm.xlu0 %2227, %v606_v2   ;;  %s2523_s27 = smov 127   ;;  %v608_v12 = vld [vmem:[%s3546_s1 + $0x10] sm:$0xff]  ;;  %v619_v16 = vld [vmem:[%s3547_s2 + $0x18] sm:$0xff]  ;;  %v626_v19 = vld [vmem:[#allocation2] sm:$0xff]  ;;  %vm786_vm9 = vcmask 1043456  }
  0x36   : > { %s2715_s19 = scalar_lea.vmem %s3545_s0, %s3561_s3  ;;  %s2524_s28 = smov 113   ;;  %v618_v14 = vld [vmem:[%s3547_s2 + $0x10] sm:$0xff]  ;;  %v629_v18 = vld [vmem:[#allocation4] sm:$0xff]  ;;  %v614_v20 = vld [vmem:[%s3546_s1 + $0x40] sm:$0xff]  ;;  %vm867_vm0 = vcmp.lt.s32.totalorder %v2829_v36, 17  ;;  %vm886_vm2 = vcmp.lt.s32.totalorder %v2829_v36, 16 }
  0x37   : > { %v2718_v3 = vld [vmem:[%s2715_s19] sm:$0xff]  ;;  %v2729_v6 = vld [vmem:[%s2715_s19 + $0x10] sm:$0xff]  ;;  %v2734_v7 = vld [vmem:[%s2715_s19 + $0x18] sm:$0xff]  ;;  %s2525_s23 = smov 112   ;;  %s2526_s14 = smov 111   ;;  %vm905_vm3 = vcmp.lt.s32.totalorder %v2829_v36, 15 }
  0x38   : > { %857 = vrot.lane.b32.xlu2 %v2718_v3, %s2519_s22  ;;  %v2737_v8 = vld [vmem:[%s2715_s19 + $0x8] sm:$0xff]  ;;  %v624_v24 = vld [vmem:[%s3547_s2 + $0x40] sm:$0xff]  ;;  %v640_v54 = vld [vmem:[#allocation9] sm:$0xf]  ;;  %vm924_vm4 = vcmp.lt.s32.totalorder %v2829_v36, 1  ;;  %vm949_vm5 = vcmp.lt.s32.totalorder %v2829_v36, 127 }
  0x39   : > { %v615_v25 = vld [vmem:[%s3546_s1 + $0x48] sm:$0xff]  ;;  %v2835_v48 = vld [vmem:[%s3556_s11] sm:$0xff]  ;;  %vm968_vm6 = vcmp.lt.s32.totalorder %v2829_v36, 113  ;;  %vm987_vm7 = vcmp.lt.s32.totalorder %v2829_v36, 112  ;;  %vm1006_vm8 = vcmp.lt.s32.totalorder %v2829_v36, 111  ;;  %vm782_vm10 = vcmask 64512  }
  0x3a   : > { %v625_v28 = vld [vmem:[%s3547_s2 + $0x48] sm:$0xff]  ;;  %v2851_v55 = vperm.slane %v2835_v48, 0  ;;  %v2860_v58 = vperm.slane %v2835_v48, 1  ;;  %vm1208_vm11 = vcmask 588800   ;;  %vm1445_vm12 = vcmask 523264  }
  0x3b   : > { %v2840_v49 = vld [vmem:[%s3556_s11 + $0x8] sm:$0xff] }
  0x3c   : > { %716 = vperm.xlu1 %2228, %v617_v4   ;;  %v2854_v56 = vperm.slane %v2840_v49, 0  ;;  %v2863_v59 = vperm.slane %v2840_v49, 1 }
  0x3d   : > { %702 = vperm.xlu0 %2227, %v607_v5  }
  0x40   : > { %859 = vrot.lane.b32.xlu2 %v2729_v6, %s2519_s22 }
  0x44   : > { %863 = vrot.lane.b32.xlu1 %v2734_v7, %s2519_s22 }
  0x45   : > { %861 = vrot.lane.b32.xlu0 %v2737_v8, %s2519_s22 }
  0x48   : > { %878 = vrot.lane.b32.xlu2 %v2718_v3, %s2520_s15 }
  0x4c   : > { %882 = vrot.lane.b32.xlu1 %v2737_v8, %s2520_s15 }
  0x4d   : > { %880 = vrot.lane.b32.xlu0 %v2729_v6, %s2520_s15 }
  0x50   : > { %884 = vrot.lane.b32.xlu2 %v2734_v7, %s2520_s15 }
  0x54   : > { %899 = vrot.lane.b32.xlu1 %v2729_v6, %s2521_s4 }
  0x55   : > { %897 = vrot.lane.b32.xlu0 %v2718_v3, %s2521_s4 }
  0x58   : > { %901 = vrot.lane.b32.xlu2 %v2737_v8, %s2521_s4 }
  0x5c   : > { %761 = vperm.xlu1 %2228, %v632_v9  }
  0x5d   : > { %903 = vrot.lane.b32.xlu0 %v2734_v7, %s2521_s4 }
  0x60   : > { %916 = vrot.lane.b32.xlu2 %v2718_v3, %s2522_s16 }
  0x64   : > { %920 = vrot.lane.b32.xlu1 %v2737_v8, %s2522_s16 }
  0x65   : > { %918 = vrot.lane.b32.xlu0 %v2729_v6, %s2522_s16 }
  0x68   : > { %922 = vrot.lane.b32.xlu2 %v2734_v7, %s2522_s16 }
  0x6c   : > { %941 = vrot.lane.b32.xlu1 %v2718_v3, %s2523_s27 }
  0x6d   : > { %768 = vperm.xlu0 %2227, %v636_v10  }
  0x70   : > { %943 = vrot.lane.b32.xlu2 %v2729_v6, %s2523_s27 }
  0x74   : > { %947 = vrot.lane.b32.xlu1 %v2734_v7, %s2523_s27 }
  0x75   : > { %945 = vrot.lane.b32.xlu0 %v2737_v8, %s2523_s27 }
  0x78   : > { %960 = vrot.lane.b32.xlu2 %v2718_v3, %s2524_s28 }
  0x7c   : > { %964 = vrot.lane.b32.xlu1 %v2737_v8, %s2524_s28 }
  0x7d   : > { %962 = vrot.lane.b32.xlu0 %v2729_v6, %s2524_s28 }
  0x80   : > { %966 = vrot.lane.b32.xlu2 %v2734_v7, %s2524_s28 }
  0x84   : > { %981 = vrot.lane.b32.xlu1 %v2729_v6, %s2525_s23 }
  0x85   : > { %979 = vrot.lane.b32.xlu0 %v2718_v3, %s2525_s23 }
  0x88   : > { %983 = vrot.lane.b32.xlu2 %v2737_v8, %s2525_s23 }
  0x8c   : > { %998 = vrot.lane.b32.xlu1 %v2718_v3, %s2526_s14 }
  0x8d   : > { %985 = vrot.lane.b32.xlu0 %v2734_v7, %s2525_s23 }
  0x90   : > { %1000 = vrot.lane.b32.xlu2 %v2729_v6, %s2526_s14 }
  0x92   : > { %v858_v11 = vpop.permute.xlu2 %857 }
  0x94   : > { %1004 = vrot.lane.b32.xlu1 %v2734_v7, %s2526_s14 }
  0x95   : > { %1002 = vrot.lane.b32.xlu0 %v2737_v8, %s2526_s14 }
  0x98   : > { %1055 = vperm.xlu2 %2229, %v608_v12  }
  0x9a   : > { %v860_v13 = vpop.permute.xlu2 %859 }
  0x9c   : > { %1069 = vperm.xlu1 %2228, %v618_v14  }
  0x9d   : > { %1060 = vperm.xlu0 %2227, %v609_v15  }
  0xa0   : > { %1074 = vperm.xlu2 %2229, %v619_v16  }
  0xa2   : > { %v2811_v17 = vpop.permute.xlu2 %878 }
  0xa4   : > { %1125 = vperm.xlu1 %2228, %v629_v18  }
  0xa5   : > { %1118 = vperm.xlu0 %2227, %v626_v19   ;;  %v2888_v19 = vperm.slane %v2840_v49, 2 }
  0xa6   : > { %v712_v21 = vpop.permute.xlu1 %711 }
  0xa7   : > { %v698_v22 = vpop.permute.xlu0 %697 }
  0xa8   : > { %663 = vperm.xlu2 %2229, %v614_v20   ;;  %v705_v26 = vmul.f32 %v698_v22, %v2718_v3  ;;  %v706_v27 = vmul.f32 %v698_v22, %v2737_v8 }
  0xaa   : > { %v885_v23 = vpop.permute.xlu2 %884  ;;  %v719_v34 = vadd.f32 %v712_v21, %v705_v26  ;;  %v720_v35 = vadd.f32 %v712_v21, %v706_v27 }
  0xac   : > { %677 = vperm.xlu1 %2228, %v624_v24   ;;  %v723_v40 = vmax.f32 %v719_v34, 0.0  ;;  %v724_v42 = vmax.f32 %v720_v35, 0.0 }
  0xad   : > { %668 = vperm.xlu0 %2227, %v615_v25  }
  0xae   : > { %v717_v30 = vpop.permute.xlu1 %716 }
  0xaf   : > { %v703_v31 = vpop.permute.xlu0 %702 }
  0xb0   : > { %682 = vperm.xlu2 %2229, %v625_v28   ;;  %v707_v32 = vmul.f32 %v703_v31, %v2729_v6  ;;  %v708_v33 = vmul.f32 %v703_v31, %v2734_v7 }
  0xb2   : > { %v721_v37 = vadd.f32 %v717_v30, %v707_v32  ;;  %v722_v38 = vadd.f32 %v717_v30, %v708_v33  ;;  %v902_v39 = vpop.permute.xlu2 %901 }
  0xb4   : > { %v725_v41 = vmax.f32 %v721_v37, 0.0  ;;  %v726_v43 = vmax.f32 %v722_v38, 0.0 }
  0xb6   : > { %v727_v44 = vpack.c.bf16 %v725_v41, %v723_v40  ;;  %v728_v45 = vpack.c.bf16 %v726_v43, %v724_v42  ;;  %v864_v46 = vpop.permute.xlu1 %863  ;;  %v2909_v40 = vperm.slane %v2840_v49, 3 }
  0xb7   : > { %v862_v47 = vpop.permute.xlu0 %861  ;;  %v869_v50 = vsel %vm867_vm0, %v860_v13, %v864_v46  ;;  %v871_v51 = vsel %vm867_vm0, %v864_v46, %v860_v13 }
  0xb8   : > { %v868_v52 = vsel %vm867_vm0, %v858_v11, %v862_v47  ;;  %v870_v53 = vsel %vm867_vm0, %v862_v47, %v858_v11  ;;  %740 = vmatpush.bf16.msra.mxu0 %v727_v44  ;;  %753 = vmatpush.bf16.msra.mxu1 %v728_v45  ;;  %v876_v60 = vmul.f32 %v2851_v55, %v871_v51 }
  0xb9   : > { %v877_v61 = vmul.f32 %v2854_v56, %v869_v50  ;;  %v874_v62 = vmul.f32 %v2851_v55, %v870_v53  ;;  %v875_v63 = vmul.f32 %v2854_v56, %v868_v52 }
  0xba   : > { %v917_v57 = vpop.permute.xlu2 %916 }
  0xbb   : > { %2072 = vmatmul.msk.bf16.vlgmr.msra.gmra.mxu0 %vm729_vm1, %v640_v54  ;;  %2073 = vmatmul.msk.bf16.vlgmr.msra.gmra.mxu1 %vm729_vm1, %v640_v54 }
  0xbe   : > { %v883_v0 = vpop.permute.xlu1 %882 }
  0xbf   : > { %v881_v1 = vpop.permute.xlu0 %880  ;;  %v887_v2 = vsel %vm886_vm2, %v2811_v17, %v883_v0  ;;  %v889_v4 = vsel %vm886_vm2, %v883_v0, %v2811_v17  ;;  %v2885_v17 = vperm.slane %v2835_v48, 2  ;;  %v2926_v0 = vperm.slane %v2835_v48, 4 }
  0xc0   : > { %v888_v5 = vsel %vm886_vm2, %v881_v1, %v885_v23  ;;  %v890_v9 = vsel %vm886_vm2, %v885_v23, %v881_v1  ;;  %v893_v10 = vmul.f32 %v2860_v58, %v889_v4  ;;  %v894_v11 = vmul.f32 %v2863_v59, %v887_v2 }
  0xc1   : > { %v895_v12 = vmul.f32 %v2860_v58, %v890_v9  ;;  %v896_v13 = vmul.f32 %v2863_v59, %v888_v5  ;;  %v2929_v1 = vperm.slane %v2840_v49, 4  ;;  %v939_v2 = vmul.f32 %v2926_v0, %v2729_v6 }
  0xc2   : > { %v1017_v14 = vadd.f32 %v893_v10, %v874_v62  ;;  %v1018_v15 = vadd.f32 %v894_v11, %v875_v63  ;;  %v923_v20 = vpop.permute.xlu2 %922  ;;  %v937_v9 = vmul.f32 %v2926_v0, %v2718_v3  ;;  %v2941_v11 = vperm.slane %v2835_v48, 5 }
  0xc3   : > { %v1019_v16 = vadd.f32 %v895_v12, %v876_v60  ;;  %v1020_v18 = vadd.f32 %v896_v13, %v877_v61  ;;  %v940_v4 = vmul.f32 %v2929_v1, %v2734_v7  ;;  %v938_v5 = vmul.f32 %v2929_v1, %v2737_v8 }
  0xc4   : > { %v2944_v12 = vperm.slane %v2840_v49, 5 }
  0xc6   : > { %v900_v21 = vpop.permute.xlu1 %899 }
  0xc7   : > { %v898_v22 = vpop.permute.xlu0 %897 }
  0xc8   : > { %v906_v23 = vsel %vm905_vm3, %v898_v22, %v902_v39  ;;  %v908_v24 = vsel %vm905_vm3, %v902_v39, %v898_v22  ;;  %v2906_v39 = vperm.slane %v2835_v48, 3 }
  0xc9   : > { %v912_v25 = vmul.f32 %v2885_v17, %v908_v24  ;;  %v913_v26 = vmul.f32 %v2888_v19, %v906_v23 }
  0xca   : > { %v944_v33 = vpop.permute.xlu2 %943 }
  0xcb   : > { %v1021_v27 = vadd.f32 %v1017_v14, %v912_v25  ;;  %v1022_v28 = vadd.f32 %v1018_v15, %v913_v26 }
  0xce   : > { %v2896_v29 = vpop.permute.xlu1 %761 }
  0xcf   : > { %v904_v30 = vpop.permute.xlu0 %903 }
  0xd0   : > { %v907_v31 = vsel %vm905_vm3, %v900_v21, %v904_v30  ;;  %v909_v32 = vsel %vm905_vm3, %v904_v30, %v900_v21 }
  0xd1   : > { %v914_v34 = vmul.f32 %v2885_v17, %v909_v32  ;;  %v915_v35 = vmul.f32 %v2888_v19, %v907_v31 }
  0xd2   : > { %v961_v53 = vpop.permute.xlu2 %960 }
  0xd3   : > { %v1023_v37 = vadd.f32 %v1019_v16, %v914_v34  ;;  %v1024_v38 = vadd.f32 %v1020_v18, %v915_v35  ;;  %v2963_v35 = vperm.slane %v2840_v49, 6 }
  0xd6   : > { %v921_v41 = vpop.permute.xlu1 %920 }
  0xd7   : > { %v919_v42 = vpop.permute.xlu0 %918  ;;  %v925_v43 = vsel %vm924_vm4, %v917_v57, %v921_v41  ;;  %v927_v44 = vsel %vm924_vm4, %v921_v41, %v917_v57 }
  0xd8   : > { %v926_v45 = vsel %vm924_vm4, %v919_v42, %v923_v20  ;;  %v928_v46 = vsel %vm924_vm4, %v923_v20, %v919_v42  ;;  %v931_v47 = vmul.f32 %v2906_v39, %v927_v44  ;;  %v932_v50 = vmul.f32 %v2909_v40, %v925_v43 }
  0xd9   : > { %v933_v51 = vmul.f32 %v2906_v39, %v928_v46  ;;  %v934_v52 = vmul.f32 %v2909_v40, %v926_v45 }
  0xda   : > { %v1025_v54 = vadd.f32 %v1021_v27, %v931_v47  ;;  %v1026_v60 = vadd.f32 %v1022_v28, %v932_v50  ;;  %v967_v10 = vpop.permute.xlu2 %966 }
  0xdb   : > { %v1027_v61 = vadd.f32 %v1023_v37, %v933_v51  ;;  %v1028_v62 = vadd.f32 %v1024_v38, %v934_v52 }
  0xdc   : > { %v1029_v18 = vadd.f32 %v1025_v54, %v937_v9  ;;  %v1030_v20 = vadd.f32 %v1026_v60, %v938_v5 }
  0xdd   : > { %v1031_v14 = vadd.f32 %v1027_v61, %v939_v2  ;;  %v1032_v15 = vadd.f32 %v1028_v62, %v940_v4  ;;  %v2979_v2 = vperm.slane %v2835_v48, 7  ;;  %v2982_v4 = vperm.slane %v2840_v49, 7 }
  0xde   : > { %v942_v57 = vpop.permute.xlu1 %941 }
  0xdf   : > { %v2923_v63 = vpop.permute.xlu0 %768 }
  0xe2   : > { %v984_v37 = vpop.permute.xlu2 %983 }
  0xe6   : > { %v948_v13 = vpop.permute.xlu1 %947 }
  0xe7   : > { %v946_v16 = vpop.permute.xlu0 %945  ;;  %v951_v21 = vsel %vm949_vm5, %v944_v33, %v948_v13  ;;  %v953_v22 = vsel %vm949_vm5, %v948_v13, %v944_v33  ;;  %v2960_v33 = vperm.slane %v2835_v48, 6 }
  0xe8   : > { %v950_v23 = vsel %vm949_vm5, %v942_v57, %v946_v16  ;;  %v952_v24 = vsel %vm949_vm5, %v946_v16, %v942_v57  ;;  %v958_v25 = vmul.f32 %v2941_v11, %v951_v21  ;;  %v959_v26 = vmul.f32 %v2944_v12, %v953_v22  ;;  %v3000_v21 = vld [vmem:[%s3556_s11 + $0x10] ss:$0 sm:$0xff]  ;;  %v3005_v22 = vld [vmem:[%s3556_s11 + $0x18] ss:$0 sm:$0xff] }
  0xe9   : > { %v956_v27 = vmul.f32 %v2941_v11, %v950_v23  ;;  %v957_v28 = vmul.f32 %v2944_v12, %v952_v24 }
  0xea   : > { %v1035_v30 = vadd.f32 %v1031_v14, %v958_v25  ;;  %v1036_v31 = vadd.f32 %v1032_v15, %v959_v26  ;;  %v1001_v62 = vpop.permute.xlu2 %1000 }
  0xeb   : > { %v1033_v32 = vadd.f32 %v1029_v18, %v956_v27  ;;  %v1034_v34 = vadd.f32 %v1030_v20, %v957_v28 }
  0xee   : > { %v965_v38 = vpop.permute.xlu1 %964 }
  0xef   : > { %v963_v41 = vpop.permute.xlu0 %962  ;;  %v969_v42 = vsel %vm968_vm6, %v961_v53, %v965_v38  ;;  %v971_v43 = vsel %vm968_vm6, %v965_v38, %v961_v53 }
  0xf0   : > { %v970_v44 = vsel %vm968_vm6, %v963_v41, %v967_v10  ;;  %v972_v45 = vsel %vm968_vm6, %v967_v10, %v963_v41  ;;  %v975_v46 = vmul.f32 %v2960_v33, %v969_v42  ;;  %v976_v47 = vmul.f32 %v2963_v35, %v971_v43 }
  0xf1   : > { %v977_v50 = vmul.f32 %v2960_v33, %v970_v44  ;;  %v978_v51 = vmul.f32 %v2963_v35, %v972_v45 }
  0xf2   : > { %v1037_v52 = vadd.f32 %v1033_v32, %v975_v46  ;;  %v1038_v54 = vadd.f32 %v1034_v34, %v976_v47  ;;  %v1056_v16 = vpop.permute.xlu2 %1055 }
  0xf3   : > { %v1039_v60 = vadd.f32 %v1035_v30, %v977_v50  ;;  %v1040_v61 = vadd.f32 %v1036_v31, %v978_v51 }
  0xf6   : > { %v982_v53 = vpop.permute.xlu1 %981 }
  0xf7   : > { %v980_v57 = vpop.permute.xlu0 %979 }
  0xf8   : > { %v988_v10 = vsel %vm987_vm7, %v980_v57, %v984_v37  ;;  %v990_v13 = vsel %vm987_vm7, %v984_v37, %v980_v57 }
  0xf9   : > { %v994_v48 = vmul.f32 %v2979_v2, %v988_v10  ;;  %v995_v49 = vmul.f32 %v2982_v4, %v990_v13 }
  0xfa   : > { %v1075_v43 = vpop.permute.xlu2 %1074 }
  0xfb   : > { %v1041_v23 = vadd.f32 %v1037_v52, %v994_v48  ;;  %v1042_v24 = vadd.f32 %v1038_v54, %v995_v49 }
  0xfe   : > { %v999_v5 = vpop.permute.xlu1 %998 }
  0xff   : > { %v986_v9 = vpop.permute.xlu0 %985 }
 0x100   : > { %v989_v14 = vsel %vm987_vm7, %v982_v53, %v986_v9  ;;  %v991_v15 = vsel %vm987_vm7, %v986_v9, %v982_v53 }
 0x101   : > { %v996_v18 = vmul.f32 %v2979_v2, %v989_v14  ;;  %v997_v20 = vmul.f32 %v2982_v4, %v991_v15 }
 0x103   : > { %v1043_v25 = vadd.f32 %v1039_v60, %v996_v18  ;;  %v1044_v26 = vadd.f32 %v1040_v61, %v997_v20  ;;  %v664_v20 = vpop.permute.xlu2 %663 }
 0x106   : > { %v1005_v27 = vpop.permute.xlu1 %1004 }
 0x107   : > { %v1003_v28 = vpop.permute.xlu0 %1002  ;;  %v1008_v30 = vsel %vm1006_vm8, %v1001_v62, %v1005_v27  ;;  %v1010_v31 = vsel %vm1006_vm8, %v1005_v27, %v1001_v62  ;;  %v672_v27 = vmul.f32 %v664_v20, %v2737_v8 }
 0x108   : > { %v1007_v32 = vsel %vm1006_vm8, %v999_v5, %v1003_v28  ;;  %v1009_v34 = vsel %vm1006_vm8, %v1003_v28, %v999_v5  ;;  %v1015_v37 = vmul.f32 %v3000_v21, %v1008_v30  ;;  %v1016_v38 = vmul.f32 %v3005_v22, %v1010_v31 }
 0x109   : > { %v1013_v41 = vmul.f32 %v3000_v21, %v1007_v32  ;;  %v1014_v42 = vmul.f32 %v3005_v22, %v1009_v34 }
 0x10a   : > { %v1047_v46 = vadd.f32 %v1043_v25, %v1015_v37  ;;  %v1048_v47 = vadd.f32 %v1044_v26, %v1016_v38 }
 0x10b   : > { %v1046_v44 = vadd.f32 %v1042_v24, %v1014_v42  ;;  %v1045_v45 = vadd.f32 %v1041_v23, %v1013_v41  ;;  %v683_v28 = vpop.permute.xlu2 %682 }
 0x10c   : > { %v1051_v52 = vmul.f32 0.11111111, %v1047_v46  ;;  %v1052_v54 = vmul.f32 0.11111111, %v1048_v47 }
 0x10d   : > { %v1050_v50 = vmul.f32 0.11111111, %v1046_v44  ;;  %v1049_v51 = vmul.f32 0.11111111, %v1045_v45 }
 0x10e   : > { %v1070_v62 = vpop.permute.xlu1 %1069 }
 0x10f   : > { %v1063_v60 = vmul.f32 %v1056_v16, %v1049_v51  ;;  %v1064_v61 = vmul.f32 %v1056_v16, %v1050_v50  ;;  %v1061_v53 = vpop.permute.xlu0 %1060  ;;  %v671_v16 = vmul.f32 %v664_v20, %v2718_v3  ;;  %v2120_v3 = vld [vmem:[#allocation10] sm:$0xff] }
 0x110   : > { %v1065_v57 = vmul.f32 %v1061_v53, %v1051_v52  ;;  %v1066_v5 = vmul.f32 %v1061_v53, %v1052_v54 }
 0x111   : > { %v1077_v9 = vadd.f32 %v1070_v62, %v1063_v60  ;;  %v1078_v10 = vadd.f32 %v1070_v62, %v1064_v61 }
 0x112   : > { %v1079_v13 = vadd.f32 %v1075_v43, %v1065_v57  ;;  %v1080_v14 = vadd.f32 %v1075_v43, %v1066_v5 }
 0x113   : > { %v1081_v15 = vmax.f32 %v1077_v9, 0.0  ;;  %v1082_v48 = vmax.f32 %v1078_v10, 0.0  ;;  %v2121_v10 = vld [vmem:[#allocation12] sm:$0xff] }
 0x114   : > { %v1083_v49 = vmax.f32 %v1079_v13, 0.0  ;;  %v1084_v18 = vmax.f32 %v1080_v14, 0.0 }
 0x116   : > { %v1085_v23 = vpack.c.bf16 %v1083_v49, %v1081_v15  ;;  %v1086_v24 = vpack.c.bf16 %v1084_v18, %v1082_v48  ;;  %v3019_v25 = vpop.permute.xlu1 %1125 }
 0x117   : > { %v1119_v26 = vpop.permute.xlu0 %1118 }
 0x11e   : > { %v678_v30 = vpop.permute.xlu1 %677 }
 0x11f   : > { %v669_v31 = vpop.permute.xlu0 %668  ;;  %v685_v32 = vadd.f32 %v678_v30, %v671_v16  ;;  %v686_v34 = vadd.f32 %v678_v30, %v672_v27 }
 0x120   : > { %v673_v37 = vmul.f32 %v669_v31, %v2729_v6  ;;  %v674_v38 = vmul.f32 %v669_v31, %v2734_v7 }
 0x121   : > { %v689_v43 = vmax.f32 %v685_v32, 0.0  ;;  %v690_v44 = vmax.f32 %v686_v34, 0.0 }
 0x122   : > { %v687_v41 = vadd.f32 %v683_v28, %v673_v37  ;;  %v688_v42 = vadd.f32 %v683_v28, %v674_v38 }
 0x124   : > { %v691_v45 = vmax.f32 %v687_v41, 0.0  ;;  %v692_v46 = vmax.f32 %v688_v42, 0.0 }
 0x126   : > { %v693_v47 = vpack.c.bf16 %v691_v45, %v689_v43  ;;  %v694_v50 = vpack.c.bf16 %v692_v46, %v690_v44  ;;  %v620_v43 = vld [vmem:[%s3547_s2 + $0x20] sm:$0xff]  ;;  %v611_v45 = vld [vmem:[%s3546_s1 + $0x28] sm:$0xff] }
 0x127   : > { %v610_v44 = vld [vmem:[%s3546_s1 + $0x20] sm:$0xff] }
 0x128   : > { %836 = vmatpush.bf16.msrb.mxu0 %v693_v47  ;;  %850 = vmatpush.bf16.msrb.mxu1 %v694_v50  ;;  %v630_v46 = vld [vmem:[#allocation4 + $0x8] sm:$0xff]  ;;  %v621_v47 = vld [vmem:[%s3547_s2 + $0x28] sm:$0xff] }
 0x129   : > { %v627_v50 = vld [vmem:[#allocation2 + $0x8] sm:$0xff] }
 0x12b   : > { %2084 = vmatmul.msk.bf16.vlgmr.msrb.gmra.mxu0 %vm729_vm1, %v2120_v3  ;;  %2085 = vmatmul.msk.bf16.vlgmr.msrb.gmra.mxu1 %vm729_vm1, %v2120_v3 }
 0x138   : > { %v742_v8 = vpop.f32.mrf.mxu0  ;;  %v755_v51 = vpop.f32.mrf.mxu1 }
 0x139   : > { %v764_v6 = vmul.f32 %v2896_v29, %v742_v8  ;;  %v765_v7 = vmul.f32 %v2896_v29, %v755_v51  ;;  %v641_v29 = vld [vmem:[#allocation9 + $0x4] sm:$0xf] }
 0x13b   : > { %v771_v52 = vadd.f32 %v2923_v63, %v764_v6  ;;  %v772_v54 = vadd.f32 %v2923_v63, %v765_v7 }
 0x13d   : > { %v773_v60 = vmax.f32 %v771_v52, 0.0  ;;  %v774_v61 = vmax.f32 %v772_v54, 0.0 }
 0x13f   : > { %v775_v62 = vpack.c.bf16 %v773_v60, %v773_v60  ;;  %v776_v57 = vpack.c.bf16 %v774_v61, %v774_v61 }
 0x140   : > { %v744_v53 = vpop.f32.mrf.mxu0  ;;  %v757_v5 = vpop.f32.mrf.mxu1 }
 0x141   : > { %v788_v9 = vsel %vm786_vm9, %v775_v62, 0  ;;  %v791_v13 = vsel %vm786_vm9, %v776_v57, 0 }
 0x142   : > { %800 = vmatpush.bf16.msra.mxu2 %v788_v9  ;;  %814 = vmatpush.bf16.msra.mxu3 %v791_v13 }
 0x145   : > { %2078 = vmatmul.msk.bf16.vlgmr.msra.gmra.mxu2 %vm782_vm10, %v2121_v10  ;;  %2079 = vmatmul.msk.bf16.vlgmr.msra.gmra.mxu3 %vm782_vm10, %v2121_v10 }
 0x146   : > { %1097 = vmatpush.bf16.msrb.mxu2 %v1085_v23  ;;  %1110 = vmatpush.bf16.msrb.mxu3 %v1086_v24 }
 0x155   : > { %2086 = vmatmul.msk.bf16.vlgmr.msrb.gmra.mxu2 %vm729_vm1, %v641_v29  ;;  %2087 = vmatmul.msk.bf16.vlgmr.msrb.gmra.mxu3 %vm729_vm1, %v641_v29 }
 0x1a8   : > { %v838_v63 = vpop.f32.mrf.mxu0  ;;  %v852_v49 = vpop.f32.mrf.mxu1 }
 0x1c8   : > { %v802_v14 = vpop.f32.mrf.mxu2  ;;  %v816_v15 = vpop.f32.mrf.mxu3 }
 0x1c9   : > { %v3037_v48 = vadd.f32 %v838_v63, %v802_v14  ;;  %v3039_v18 = vadd.f32 %v852_v49, %v816_v15 }
 0x1d0   : > { %v3041_v20 = vpop.f32.mrf.mxu2  ;;  %v3043_v23 = vpop.f32.mrf.mxu3 }
 0x1d8   : > { %v1099_v24 = vpop.f32.mrf.mxu2  ;;  %v1112_v27 = vpop.f32.mrf.mxu3 }
 0x1d9   : > { %v1100_v16 = vadd.f32 %v1099_v24, %v742_v8  ;;  %v1113_v28 = vadd.f32 %v1112_v27, %v755_v51 }
 0x1db   : > { %v1121_v30 = vmul.f32 %v1119_v26, %v1100_v16  ;;  %v1122_v31 = vmul.f32 %v1119_v26, %v1113_v28  ;;  %v633_v26 = vld [vmem:[#allocation6 + $0x8] sm:$0xff] }
 0x1dd   : > { %v1128_v32 = vadd.f32 %v3019_v25, %v1121_v30  ;;  %v1129_v34 = vadd.f32 %v3019_v25, %v1122_v31  ;;  %v637_v25 = vld [vmem:[#allocation7 + $0x8] sm:$0xff] }
 0x1df   : > { %v3047_v37 = vmax.f32 %v1128_v32, 0.0  ;;  %v3049_v38 = vmax.f32 %v1129_v34, 0.0 }
 0x1e0   : > { %v1101_v41 = vpop.f32.mrf.mxu2  ;;  %v1114_v42 = vpop.f32.mrf.mxu3 }
 0x1e1   : > { %1174 = vrot.lane.b32.xlu2 %v3047_v37, %s2524_s28  ;;  %1190 = vrot.lane.b32.xlu0 %v3047_v37, %s2526_s14 }
 0x1e2   : > { %1192 = vrot.lane.b32.xlu1 %v3049_v38, %s2526_s14 }
 0x1e9   : > { %1184 = vrot.lane.b32.xlu2 %v3049_v38, %s2525_s23  ;;  %1176 = vrot.lane.b32.xlu0 %v3049_v38, %s2524_s28 }
 0x1ea   : > { %1182 = vrot.lane.b32.xlu1 %v3047_v37, %s2525_s23 }
 0x1f1   : > { %1148 = vrot.lane.b32.xlu2 %v3047_v37, %s2521_s4  ;;  %1166 = vrot.lane.b32.xlu0 %v3047_v37, %s2523_s27 }
 0x1f2   : > { %1168 = vrot.lane.b32.xlu1 %v3049_v38, %s2523_s27 }
 0x1f9   : > { %1158 = vrot.lane.b32.xlu2 %v3049_v38, %s2522_s16  ;;  %1150 = vrot.lane.b32.xlu0 %v3049_v38, %s2521_s4 }
 0x1fa   : > { %1156 = vrot.lane.b32.xlu1 %v3047_v37, %s2522_s16 }
 0x201   : > { %1140 = vrot.lane.b32.xlu2 %v3047_v37, %s2520_s15  ;;  %1132 = vrot.lane.b32.xlu0 %v3047_v37, %s2519_s22 }
 0x202   : > { %1134 = vrot.lane.b32.xlu1 %v3049_v38, %s2519_s22 }
 0x209   : > { %1253 = vperm.xlu2 %2229, %v637_v25   ;;  %1142 = vrot.lane.b32.xlu0 %v3049_v38, %s2520_s15  ;;  %v1164_v25 = vmul.f32 %v3047_v37, %v2926_v0 }
 0x20a   : > { %1246 = vperm.xlu1 %2228, %v633_v26   ;;  %v1165_v26 = vmul.f32 %v3049_v38, %v2929_v1 }
 0x211   : > { %1400 = vperm.xlu2 %2229, %v620_v43   ;;  %1388 = vperm.xlu0 %2227, %v610_v44  }
 0x212   : > { %1393 = vperm.xlu1 %2228, %v611_v45  }
 0x219   : > { %1498 = vperm.xlu2 %2229, %v630_v46   ;;  %1405 = vperm.xlu0 %2227, %v621_v47  }
 0x21a   : > { %1491 = vperm.xlu1 %2228, %v627_v50  }
 0x23b   : > { %v1175_v3 = vpop.permute.xlu2 %1174 }
 0x243   : > { %v1185_v60 = vpop.permute.xlu2 %1184 }
 0x24b   : > { %v1149_v28 = vpop.permute.xlu2 %1148 }
 0x253   : > { %v1191_v8 = vpop.permute.xlu0 %1190  ;;  %v1159_v46 = vpop.permute.xlu2 %1158 }
 0x254   : > { %v1193_v6 = vpop.permute.xlu1 %1192 }
 0x255   : > { %v1194_v51 = vsel %vm1006_vm8, %v1191_v8, %v1193_v6  ;;  %v1195_v7 = vsel %vm1006_vm8, %v1193_v6, %v1191_v8 }
 0x256   : > { %v1196_v52 = vmul.f32 %v3000_v21, %v1194_v51  ;;  %v1197_v54 = vmul.f32 %v3005_v22, %v1195_v7 }
 0x258   : > { %v1206_v61 = vpack.c.bf16 %v1196_v52, %v1196_v52  ;;  %v1207_v62 = vpack.c.bf16 %v1197_v54, %v1197_v54 }
 0x25a   : > { %v1213_v53 = vsel %vm786_vm9, %v1206_v61, 0  ;;  %v1216_v57 = vsel %vm786_vm9, %v1207_v62, 0 }
 0x25b   : > { %1221 = vmatpush.bf16.msra.mxu0 %v1213_v53  ;;  %1234 = vmatpush.bf16.msra.mxu1 %v1216_v57  ;;  %v1177_v5 = vpop.permute.xlu0 %1176  ;;  %v1141_v57 = vpop.permute.xlu2 %1140 }
 0x25c   : > { %v1183_v9 = vpop.permute.xlu1 %1182  ;;  %v1178_v10 = vsel %vm968_vm6, %v1175_v3, %v1177_v5  ;;  %v1179_v13 = vsel %vm968_vm6, %v1177_v5, %v1175_v3 }
 0x25d   : > { %v1186_v29 = vsel %vm987_vm7, %v1183_v9, %v1185_v60  ;;  %v1187_v63 = vsel %vm987_vm7, %v1185_v60, %v1183_v9  ;;  %v1180_v14 = vmul.f32 %v1178_v10, %v2960_v33  ;;  %v1181_v15 = vmul.f32 %v1179_v13, %v2963_v35 }
 0x25e   : > { %v1188_v49 = vmul.f32 %v1186_v29, %v2979_v2  ;;  %v1189_v24 = vmul.f32 %v1187_v63, %v2982_v4 }
 0x260   : > { %v1204_v16 = vpack.c.bf16 %v1188_v49, %v1180_v14  ;;  %v1205_v27 = vpack.c.bf16 %v1189_v24, %v1181_v15  ;;  %v654_v24 = vld [vmem:[#allocation13] sm:$0xf] }
 0x262   : > { %1222 = vmatpush.bf16.msra.mxu0 %v1204_v16  ;;  %1235 = vmatpush.bf16.msra.mxu1 %v1205_v27  ;;  %v3151_v16 = vpop.f32.mrf.mxu0  ;;  %v3153_v27 = vpop.f32.mrf.mxu1 }
 0x263   : > { %v1167_v30 = vpop.permute.xlu0 %1166 }
 0x264   : > { %v1169_v31 = vpop.permute.xlu1 %1168 }
 0x265   : > { %v1170_v32 = vsel %vm949_vm5, %v1167_v30, %v1169_v31  ;;  %v1171_v34 = vsel %vm949_vm5, %v1169_v31, %v1167_v30 }
 0x266   : > { %v1172_v41 = vmul.f32 %v1170_v32, %v2941_v11  ;;  %v1173_v42 = vmul.f32 %v1171_v34, %v2944_v12 }
 0x268   : > { %v1202_v43 = vpack.c.bf16 %v1172_v41, %v1164_v25  ;;  %v1203_v44 = vpack.c.bf16 %v1173_v42, %v1165_v26  ;;  %v1254_v41 = vpop.permute.xlu2 %1253 }
 0x26a   : > { %1223 = vmatpush.bf16.msra.mxu0 %v1202_v43  ;;  %1236 = vmatpush.bf16.msra.mxu1 %v1203_v44 }
 0x26b   : > { %v1151_v45 = vpop.permute.xlu0 %1150 }
 0x26c   : > { %v1157_v47 = vpop.permute.xlu1 %1156  ;;  %v1152_v50 = vsel %vm905_vm3, %v1149_v28, %v1151_v45  ;;  %v1153_v3 = vsel %vm905_vm3, %v1151_v45, %v1149_v28 }
 0x26d   : > { %v1160_v8 = vsel %vm924_vm4, %v1157_v47, %v1159_v46  ;;  %v1161_v37 = vsel %vm924_vm4, %v1159_v46, %v1157_v47  ;;  %v1154_v38 = vmul.f32 %v1153_v3, %v2885_v17  ;;  %v1155_v6 = vmul.f32 %v1152_v50, %v2888_v19  ;;  %v1323_v50 = vld [vmem:[%s3557_s12 + $0x78] sm:$0xff] }
 0x26e   : > { %v1162_v51 = vmul.f32 %v1161_v37, %v2906_v39  ;;  %v1163_v7 = vmul.f32 %v1160_v8, %v2909_v40  ;;  %v1339_v3 = vld [vmem:[%s3557_s12 + $0xf8] sm:$0xff] }
 0x270   : > { %v1200_v52 = vpack.c.bf16 %v1162_v51, %v1154_v38  ;;  %v1201_v54 = vpack.c.bf16 %v1163_v7, %v1155_v6  ;;  %v2122_v38 = vld [vmem:[#allocation12 + $0x8] sm:$0xff]  ;;  %v1321_v7 = vld [vmem:[%s3557_s12 + $0x68] sm:$0xff] }
 0x271   : > { %v1322_v6 = vld [vmem:[%s3557_s12 + $0x70] sm:$0xff] }
 0x272   : > { %1224 = vmatpush.bf16.msra.mxu0 %v1200_v52  ;;  %1237 = vmatpush.bf16.msra.mxu1 %v1201_v54  ;;  %v1338_v51 = vld [vmem:[%s3557_s12 + $0xf0] sm:$0xff]  ;;  %v1337_v52 = vld [vmem:[%s3557_s12 + $0xe8] sm:$0xff]  ;;  %v1320_v54 = vld [vmem:[%s3557_s12 + $0x60] sm:$0xff] }
 0x273   : > { %v1133_v60 = vpop.permute.xlu0 %1132 }
 0x274   : > { %v1135_v61 = vpop.permute.xlu1 %1134 }
 0x275   : > { %v1136_v62 = vsel %vm867_vm0, %v1133_v60, %v1135_v61  ;;  %v1137_v53 = vsel %vm867_vm0, %v1135_v61, %v1133_v60  ;;  %v1336_v60 = vld [vmem:[%s3557_s12 + $0xe0] sm:$0xff]  ;;  %v1319_v61 = vld [vmem:[%s3557_s12 + $0x58] sm:$0xff] }
 0x276   : > { %v1138_v13 = vmul.f32 %v1137_v53, %v2851_v55  ;;  %v1139_v29 = vmul.f32 %v1136_v62, %v2854_v56  ;;  %v1335_v62 = vld [vmem:[%s3557_s12 + $0xd8] sm:$0xff]  ;;  %v1318_v53 = vld [vmem:[%s3557_s12 + $0x50] sm:$0xff] }
 0x27b   : > { %v1143_v5 = vpop.permute.xlu0 %1142 }
 0x27c   : > { %v1144_v9 = vsel %vm886_vm2, %v1141_v57, %v1143_v5  ;;  %v1145_v10 = vsel %vm886_vm2, %v1143_v5, %v1141_v57  ;;  %v1247_v28 = vpop.permute.xlu1 %1246  ;;  %v1334_v57 = vld [vmem:[%s3557_s12 + $0xd0] sm:$0xff]  ;;  %v1317_v5 = vld [vmem:[%s3557_s12 + $0x48] sm:$0xff] }
 0x27d   : > { %v1146_v63 = vmul.f32 %v1145_v10, %v2860_v58  ;;  %v1147_v14 = vmul.f32 %v1144_v9, %v2863_v59  ;;  %v1333_v9 = vld [vmem:[%s3557_s12 + $0xc8] sm:$0xff]  ;;  %v1316_v10 = vld [vmem:[%s3557_s12 + $0x40] sm:$0xff] }
 0x27f   : > { %v1198_v15 = vpack.c.bf16 %v1146_v63, %v1138_v13  ;;  %v1199_v49 = vpack.c.bf16 %v1147_v14, %v1139_v29  ;;  %v1332_v13 = vld [vmem:[%s3557_s12 + $0xc0] sm:$0xff]  ;;  %v1315_v29 = vld [vmem:[%s3557_s12 + $0x38] sm:$0xff]  ;;  %v1314_v14 = vld [vmem:[%s3557_s12 + $0x30] sm:$0xff] }
 0x280   : > { %v1331_v63 = vld [vmem:[%s3557_s12 + $0xb8] sm:$0xff] }
 0x281   : > { %1225 = vmatpush.bf16.msra.mxu0 %v1198_v15  ;;  %1238 = vmatpush.bf16.msra.mxu1 %v1199_v49  ;;  %v1330_v15 = vld [vmem:[%s3557_s12 + $0xb0] sm:$0xff]  ;;  %v1313_v49 = vld [vmem:[%s3557_s12 + $0x28] sm:$0xff] }
 0x284   : > { %2088 = vmatmul.msk.bf16.vlgmr.msra.gmra.mxu0 %vm1208_vm11, %v654_v24  ;;  %2089 = vmatmul.msk.bf16.vlgmr.msra.gmra.mxu1 %vm1208_vm11, %v654_v24  ;;  %v1329_v24 = vld [vmem:[%s3557_s12 + $0xa8] sm:$0xff] }
 0x301   : > { %v3155_v30 = vpop.f32.mrf.mxu0  ;;  %v3157_v31 = vpop.f32.mrf.mxu1 }
 0x302   : > { %v1249_v32 = vmul.f32 %v1247_v28, %v3155_v30  ;;  %v1250_v34 = vmul.f32 %v1247_v28, %v3157_v31  ;;  %v1312_v28 = vld [vmem:[%s3557_s12 + $0x20] sm:$0xff] }
 0x304   : > { %v1256_v42 = vadd.f32 %v1254_v41, %v1249_v32  ;;  %v1257_v25 = vadd.f32 %v1254_v41, %v1250_v34  ;;  %v1328_v32 = vld [vmem:[%s3557_s12 + $0xa0] sm:$0xff]  ;;  %v1311_v34 = vld [vmem:[%s3557_s12 + $0x18] sm:$0xff] }
 0x305   : > { %v1327_v41 = vld [vmem:[%s3557_s12 + $0x98] sm:$0xff] }
 0x306   : > { %v1258_v26 = vmax.f32 %v1256_v42, 0.0  ;;  %v1259_v43 = vmax.f32 %v1257_v25, 0.0  ;;  %v1310_v42 = vld [vmem:[%s3557_s12 + $0x10] sm:$0xff] }
 0x307   : > { %v1326_v25 = vld [vmem:[%s3557_s12 + $0x90] sm:$0xff] }
 0x308   : > { %v1260_v44 = vpack.c.bf16 %v1258_v26, %v1258_v26  ;;  %v1261_v45 = vpack.c.bf16 %v1259_v43, %v1259_v43  ;;  %v1309_v26 = vld [vmem:[%s3557_s12 + $0x8] sm:$0xff] }
 0x309   : > { %v1229_v46 = vpop.f32.mrf.mxu0  ;;  %v1242_v47 = vpop.f32.mrf.mxu1  ;;  %v1325_v43 = vld [vmem:[%s3557_s12 + $0x88] sm:$0xff] }
 0x30a   : > { %v1271_v8 = vsel %vm786_vm9, %v1260_v44, 0  ;;  %v1274_v37 = vsel %vm786_vm9, %v1261_v45, 0  ;;  %v1308_v44 = vld [vmem:[%s3557_s12] sm:$0xff]  ;;  %v3266_v47 = vld [vmem:[%s2715_s19 + $0x8] sm:$0xff] }
 0x30b   : > { %1283 = vmatpush.bf16.msra.mxu2 %v1271_v8  ;;  %1297 = vmatpush.bf16.msra.mxu3 %v1274_v37  ;;  %v1324_v45 = vld [vmem:[%s3557_s12 + $0x80] sm:$0xff] }
 0x30c   : > { %v3262_v46 = vld [vmem:[%s2715_s19] sm:$0xff] }
 0x30e   : > { %2094 = vmatmul.msk.bf16.vlgmr.msra.gmra.mxu2 %vm782_vm10, %v2122_v38  ;;  %2095 = vmatmul.msk.bf16.vlgmr.msra.gmra.mxu3 %vm782_vm10, %v2122_v38 }
 0x30f   : > { %1340 = vmatpush.msrb.mxu2 %v1323_v50  ;;  %1363 = vmatpush.msrb.mxu3 %v1339_v3  ;;  %v3270_v50 = vld [vmem:[%s2715_s19 + $0x10] sm:$0xff]  ;;  %v3274_v3 = vld [vmem:[%s2715_s19 + $0x18] sm:$0xff] }
 0x311   : > { %1341 = vmatpush.msrb.mxu2 %v1322_v6  ;;  %1364 = vmatpush.msrb.mxu3 %v1338_v51  ;;  %v841_v51 = vadd.f32 %v3151_v16, %v3041_v20  ;;  %v1439_v20 = vld [vmem:[%s3558_s13 + $0x50] sm:$0xff] }
 0x312   : > { %v1435_v16 = vld [vmem:[%s3558_s13 + $0x30] sm:$0xff] }
 0x313   : > { %1342 = vmatpush.msrb.mxu2 %v1321_v7  ;;  %1365 = vmatpush.msrb.mxu3 %v1337_v52  ;;  %v855_v7 = vadd.f32 %v3153_v27, %v3043_v23  ;;  %v1437_v23 = vld [vmem:[%s3558_s13 + $0x40] sm:$0xff] }
 0x314   : > { %v1433_v27 = vld [vmem:[%s3558_s13 + $0x20] sm:$0xff] }
 0x315   : > { %1343 = vmatpush.msrb.mxu2 %v1320_v54  ;;  %1366 = vmatpush.msrb.mxu3 %v1336_v60 }
 0x317   : > { %1344 = vmatpush.msrb.mxu2 %v1319_v61  ;;  %1367 = vmatpush.msrb.mxu3 %v1335_v62 }
 0x319   : > { %1345 = vmatpush.msrb.mxu2 %v1318_v53  ;;  %1368 = vmatpush.msrb.mxu3 %v1334_v57  ;;  %v1431_v57 = vld [vmem:[%s3558_s13 + $0x10] sm:$0xff] }
 0x31b   : > { %1346 = vmatpush.msrb.mxu2 %v1317_v5  ;;  %1369 = vmatpush.msrb.mxu3 %v1333_v9  ;;  %v1389_v5 = vpop.permute.xlu0 %1388 }
 0x31d   : > { %1347 = vmatpush.msrb.mxu2 %v1316_v10  ;;  %1370 = vmatpush.msrb.mxu3 %v1332_v13 }
 0x31f   : > { %1348 = vmatpush.msrb.mxu2 %v1315_v29  ;;  %1371 = vmatpush.msrb.mxu3 %v1331_v63 }
 0x321   : > { %1349 = vmatpush.msrb.mxu2 %v1314_v14  ;;  %1372 = vmatpush.msrb.mxu3 %v1330_v15  ;;  %v1401_v14 = vpop.permute.xlu2 %1400  ;;  %v1394_v15 = vpop.permute.xlu1 %1393 }
 0x323   : > { %1350 = vmatpush.msrb.mxu2 %v1313_v49  ;;  %1373 = vmatpush.msrb.mxu3 %v1329_v24 }
 0x325   : > { %1351 = vmatpush.msrb.mxu2 %v1312_v28  ;;  %1374 = vmatpush.msrb.mxu3 %v1328_v32  ;;  %v1406_v28 = vpop.permute.xlu0 %1405 }
 0x327   : > { %1352 = vmatpush.msrb.mxu2 %v1311_v34  ;;  %1375 = vmatpush.msrb.mxu3 %v1327_v41 }
 0x329   : > { %1353 = vmatpush.msrb.mxu2 %v1310_v42  ;;  %1376 = vmatpush.msrb.mxu3 %v1326_v25  ;;  %v1444_v25 = vld [vmem:[%s3558_s13 + $0x78] sm:$0xff] }
 0x32b   : > { %1354 = vmatpush.msrb.mxu2 %v1309_v26  ;;  %1377 = vmatpush.msrb.mxu3 %v1325_v43  ;;  %v642_v26 = vld [vmem:[#allocation9 + $0x8] sm:$0xf]  ;;  %v1442_v43 = vld [vmem:[%s3558_s13 + $0x68] sm:$0xff] }
 0x32d   : > { %1355 = vmatpush.msrb.mxu2 %v1308_v44  ;;  %1378 = vmatpush.msrb.mxu3 %v1324_v45  ;;  %v1440_v44 = vld [vmem:[%s3558_s13 + $0x58] sm:$0xff]  ;;  %v1438_v45 = vld [vmem:[%s3558_s13 + $0x48] sm:$0xff] }
 0x32e   : > { %1356 = vmatmul.f32.vlgmr.msrb.gmra.mxu2 %v3262_v46  ;;  %1379 = vmatmul.f32.vlgmr.msrb.gmra.mxu3 %v3266_v47 }
 0x336   : > { %1359 = vmatmul.f32.gmra.mxu2 %v3270_v50  ;;  %1382 = vmatmul.f32.gmra.mxu3 %v3274_v3 }
 0x391   : > { %v1285_v8 = vpop.f32.mrf.mxu2  ;;  %v1299_v37 = vpop.f32.mrf.mxu3 }
 0x392   : > { %v3278_v38 = vadd.f32 %v1285_v8, %v3037_v48  ;;  %v3281_v6 = vadd.f32 %v1299_v37, %v3039_v18  ;;  %v1443_v48 = vld [vmem:[%s3558_s13 + $0x70] sm:$0xff]  ;;  %v1441_v18 = vld [vmem:[%s3558_s13 + $0x60] sm:$0xff]  ;;  %v1436_v8 = vld [vmem:[%s3558_s13 + $0x38] sm:$0xff] }
 0x393   : > { %1457 = vmatpush.msrb.mxu1 %v1443_v48  ;;  %v1434_v37 = vld [vmem:[%s3558_s13 + $0x28] sm:$0xff] }
 0x395   : > { %1458 = vmatpush.msrb.mxu1 %v1441_v18 }
 0x397   : > { %1459 = vmatpush.msrb.mxu1 %v1439_v20 }
 0x399   : > { %v1287_v52 = vpop.f32.mrf.mxu2  ;;  %v1301_v54 = vpop.f32.mrf.mxu3  ;;  %1460 = vmatpush.msrb.mxu1 %v1437_v23 }
 0x39a   : > { %v3287_v60 = vadd.f32 %v1287_v52, %v841_v51  ;;  %v3289_v61 = vadd.f32 %v1301_v54, %v855_v7  ;;  %v1432_v51 = vld [vmem:[%s3558_s13 + $0x18] sm:$0xff]  ;;  %v1429_v7 = vld [vmem:[%s3558_s13] sm:$0xff]  ;;  %v1430_v52 = vld [vmem:[%s3558_s13 + $0x8] sm:$0xff] }
 0x39b   : > { %1461 = vmatpush.msrb.mxu1 %v1435_v16 }
 0x39d   : > { %1462 = vmatpush.msrb.mxu1 %v1433_v27  ;;  %v1492_v27 = vpop.permute.xlu1 %1491 }
 0x39f   : > { %1463 = vmatpush.msrb.mxu1 %v1431_v57  ;;  %v1499_v57 = vpop.permute.xlu2 %1498 }
 0x3a1   : > { %1464 = vmatpush.msrb.mxu1 %v1429_v7 }
 0x3b1   : > { %v1357_v62 = vpop.f32.mrf.mxu2  ;;  %v1380_v53 = vpop.f32.mrf.mxu3 }
 0x3b2   : > { %v1381_v9 = vadd.f32 %v1380_v53, %v1357_v62 }
 0x3b4   : > { %v1396_v10 = vmul.f32 %v1389_v5, %v1381_v9 }
 0x3b6   : > { %v1408_v49 = vadd.f32 %v1401_v14, %v1396_v10 }
 0x3b8   : > { %v1410_v34 = vmax.f32 %v1408_v49, 0.0 }
 0x3b9   : > { %v1360_v13 = vpop.f32.mrf.mxu2  ;;  %v1383_v29 = vpop.f32.mrf.mxu3 }
 0x3ba   : > { %v1384_v63 = vadd.f32 %v1383_v29, %v1360_v13  ;;  %v1683_v29 = vadd.f32 %v3274_v3, %v3270_v50 }
 0x3bc   : > { %v1397_v24 = vmul.f32 %v1394_v15, %v1384_v63  ;;  %v1680_v63 = vadd.f32 %v3266_v47, %v3262_v46 }
 0x3be   : > { %v1409_v32 = vadd.f32 %v1406_v28, %v1397_v24 }
 0x3c0   : > { %v1411_v41 = vmax.f32 %v1409_v32, 0.0 }
 0x3c2   : > { %v1412_v42 = vpack.c.bf16 %v1411_v41, %v1410_v34 }
 0x3c4   : > { %1423 = vmatpush.bf16.msrb.mxu0 %v1412_v42 }
 0x3c7   : > { %2096 = vmatmul.msk.bf16.vlgmr.msrb.gmra.mxu0 %vm729_vm1, %v642_v26 }
 0x3c8   : > { %1477 = vmatpush.msra.mxu0 %v1444_v25 }
 0x3ca   : > { %1478 = vmatpush.msra.mxu0 %v1442_v43 }
 0x3cc   : > { %1479 = vmatpush.msra.mxu0 %v1440_v44 }
 0x3ce   : > { %1480 = vmatpush.msra.mxu0 %v1438_v45 }
 0x3d0   : > { %1481 = vmatpush.msra.mxu0 %v1436_v8 }
 0x3d2   : > { %1482 = vmatpush.msra.mxu0 %v1434_v37 }
 0x3d4   : > { %1483 = vmatpush.msra.mxu0 %v1432_v51 }
 0x3d6   : > { %1484 = vmatpush.msra.mxu0 %v1430_v52 }
 0x444   : > { %v1425_v54 = vpop.f32.mrf.mxu0 }
 0x445   : > { %2097 = vmatmul.msk.f32.vlgmr.msrb.gmra.mxu1 %vm1445_vm12, %v1425_v54  ;;  %2098 = vmatmul.msk.f32.vlgmr.msra.gmra.mxu0 %vm1445_vm12, %v1425_v54 }
 0x44c   : > { %v1427_v48 = vpop.f32.mrf.mxu0 }
 0x4c2   : > { %v1466_v18 = vpop.f32.mrf.mxu1  ;;  %v1486_v20 = vpop.f32.mrf.mxu0 }
 0x4c3   : > { %v1467_v23 = vadd.f32 %v1466_v18, %v3155_v30  ;;  %v1487_v16 = vadd.f32 %v1486_v20, %v3157_v31  ;;  %v628_v30 = vld [vmem:[#allocation2 + $0x10] sm:$0xff]  ;;  %v631_v31 = vld [vmem:[#allocation4 + $0x10] sm:$0xff] }
 0x4c5   : > { %v1494_v62 = vmul.f32 %v1492_v27, %v1467_v23  ;;  %v1495_v53 = vmul.f32 %v1492_v27, %v1487_v16 }
 0x4c7   : > { %v1501_v5 = vadd.f32 %v1499_v57, %v1494_v62  ;;  %v1502_v9 = vadd.f32 %v1499_v57, %v1495_v53 }
 0x4c9   : > { %v1503_v10 = vmax.f32 %v1501_v5, 0.0  ;;  %v1504_v13 = vmax.f32 %v1502_v9, 0.0 }
 0x4cb   : > { %1547 = vrot.lane.b32.xlu2 %v1503_v10, %s2524_s28  ;;  %1563 = vrot.lane.b32.xlu0 %v1503_v10, %s2526_s14  ;;  %v1537_v27 = vmul.f32 %v1503_v10, %v2926_v0  ;;  %v1538_v62 = vmul.f32 %v1504_v13, %v2929_v1 }
 0x4cc   : > { %1565 = vrot.lane.b32.xlu1 %v1504_v13, %s2526_s14 }
 0x4d3   : > { %1557 = vrot.lane.b32.xlu2 %v1504_v13, %s2525_s23  ;;  %1549 = vrot.lane.b32.xlu0 %v1504_v13, %s2524_s28 }
 0x4d4   : > { %1555 = vrot.lane.b32.xlu1 %v1503_v10, %s2525_s23 }
 0x4db   : > { %1521 = vrot.lane.b32.xlu2 %v1503_v10, %s2521_s4  ;;  %1539 = vrot.lane.b32.xlu0 %v1503_v10, %s2523_s27 }
 0x4dc   : > { %1541 = vrot.lane.b32.xlu1 %v1504_v13, %s2523_s27 }
 0x4e3   : > { %1531 = vrot.lane.b32.xlu2 %v1504_v13, %s2522_s16  ;;  %1523 = vrot.lane.b32.xlu0 %v1504_v13, %s2521_s4 }
 0x4e4   : > { %1529 = vrot.lane.b32.xlu1 %v1503_v10, %s2522_s16 }
 0x4eb   : > { %1513 = vrot.lane.b32.xlu2 %v1503_v10, %s2520_s15  ;;  %1505 = vrot.lane.b32.xlu0 %v1503_v10, %s2519_s22 }
 0x4ec   : > { %1507 = vrot.lane.b32.xlu1 %v1504_v13, %s2519_s22 }
 0x4f3   : > { %1515 = vrot.lane.b32.xlu0 %v1504_v13, %s2520_s15 }
 0x4fb   : > { %1720 = vperm.xlu0 %2227, %v628_v30  }
 0x503   : > { %1727 = vperm.xlu0 %2227, %v631_v31  }
 0x514   : > { %1684 = vadd.xlane.f32.xlu2 %v1683_v29 }
 0x516   : > { %1681 = vadd.xlane.f32.xlu1 %v1680_v63 }
 0x525   : > { %v1548_v14 = vpop.permute.xlu2 %1547 }
 0x52d   : > { %v1558_v41 = vpop.permute.xlu2 %1557 }
 0x535   : > { %v1522_v52 = vpop.permute.xlu2 %1521 }
 0x53d   : > { %v1564_v15 = vpop.permute.xlu0 %1563  ;;  %v1532_v9 = vpop.permute.xlu2 %1531 }
 0x53e   : > { %v1566_v49 = vpop.permute.xlu1 %1565 }
 0x53f   : > { %v1567_v24 = vsel %vm1006_vm8, %v1564_v15, %v1566_v49  ;;  %v1568_v28 = vsel %vm1006_vm8, %v1566_v49, %v1564_v15 }
 0x540   : > { %v1569_v32 = vmul.f32 %v3000_v21, %v1567_v24  ;;  %v1570_v34 = vmul.f32 %v3005_v22, %v1568_v28 }
 0x542   : > { %v1579_v50 = vpack.c.bf16 %v1569_v32, %v1569_v32  ;;  %v1580_v3 = vpack.c.bf16 %v1570_v34, %v1570_v34 }
 0x544   : > { %v1585_v46 = vsel %vm786_vm9, %v1579_v50, 0  ;;  %v1588_v47 = vsel %vm786_vm9, %v1580_v3, 0 }
 0x545   : > { %1593 = vmatpush.bf16.msra.mxu1 %v1585_v46  ;;  %1606 = vmatpush.bf16.msra.mxu2 %v1588_v47  ;;  %v1550_v42 = vpop.permute.xlu0 %1549  ;;  %v1514_v3 = vpop.permute.xlu2 %1513 }
 0x546   : > { %v1551_v25 = vsel %vm968_vm6, %v1548_v14, %v1550_v42  ;;  %v1552_v26 = vsel %vm968_vm6, %v1550_v42, %v1548_v14  ;;  %v1556_v43 = vpop.permute.xlu1 %1555 }
 0x547   : > { %v1553_v21 = vmul.f32 %v1551_v25, %v2960_v33  ;;  %v1554_v22 = vmul.f32 %v1552_v26, %v2963_v35  ;;  %v1559_v44 = vsel %vm987_vm7, %v1556_v43, %v1558_v41  ;;  %v1560_v45 = vsel %vm987_vm7, %v1558_v41, %v1556_v43 }
 0x548   : > { %v1561_v8 = vmul.f32 %v1559_v44, %v2979_v2  ;;  %v1562_v37 = vmul.f32 %v1560_v45, %v2982_v4  ;;  %v655_v45 = vld [vmem:[#allocation13 + $0x4] sm:$0xf] }
 0x54a   : > { %v1577_v51 = vpack.c.bf16 %v1561_v8, %v1553_v21  ;;  %v1578_v7 = vpack.c.bf16 %v1562_v37, %v1554_v22  ;;  %v613_v8 = vld [vmem:[%s3546_s1 + $0x38] sm:$0xff] }
 0x54c   : > { %1594 = vmatpush.bf16.msra.mxu1 %v1577_v51  ;;  %1607 = vmatpush.bf16.msra.mxu2 %v1578_v7  ;;  %v623_v7 = vld [vmem:[%s3547_s2 + $0x38] sm:$0xff] }
 0x54d   : > { %v1540_v54 = vpop.permute.xlu0 %1539 }
 0x54e   : > { %v1542_v48 = vpop.permute.xlu1 %1541 }
 0x54f   : > { %v1543_v18 = vsel %vm949_vm5, %v1540_v54, %v1542_v48  ;;  %v1544_v20 = vsel %vm949_vm5, %v1542_v48, %v1540_v54 }
 0x550   : > { %v1545_v23 = vmul.f32 %v1543_v18, %v2941_v11  ;;  %v1546_v16 = vmul.f32 %v1544_v20, %v2944_v12  ;;  %v622_v20 = vld [vmem:[%s3547_s2 + $0x30] sm:$0xff] }
 0x552   : > { %v1575_v53 = vpack.c.bf16 %v1545_v23, %v1537_v27  ;;  %v1576_v57 = vpack.c.bf16 %v1546_v16, %v1538_v62 }
 0x554   : > { %1595 = vmatpush.bf16.msra.mxu1 %v1575_v53  ;;  %1608 = vmatpush.bf16.msra.mxu2 %v1576_v57 }
 0x555   : > { %v1524_v5 = vpop.permute.xlu0 %1523 }
 0x556   : > { %v1525_v30 = vsel %vm905_vm3, %v1522_v52, %v1524_v5  ;;  %v1526_v31 = vsel %vm905_vm3, %v1524_v5, %v1522_v52  ;;  %v1530_v29 = vpop.permute.xlu1 %1529  ;;  %v612_v52 = vld [vmem:[%s3546_s1 + $0x30] sm:$0xff]  ;;  %v643_v5 = vld [vmem:[#allocation9 + $0xc] sm:$0xf] }
 0x557   : > { %v1527_v63 = vmul.f32 %v1526_v31, %v2885_v17  ;;  %v1528_v14 = vmul.f32 %v1525_v30, %v2888_v19  ;;  %v1533_v10 = vsel %vm924_vm4, %v1530_v29, %v1532_v9  ;;  %v1534_v13 = vsel %vm924_vm4, %v1532_v9, %v1530_v29  ;;  %v634_v29 = vld [vmem:[#allocation6 + $0x10] sm:$0xff] }
 0x558   : > { %v1535_v15 = vmul.f32 %v1534_v13, %v2906_v39  ;;  %v1536_v49 = vmul.f32 %v1533_v10, %v2909_v40 }
 0x55a   : > { %v1573_v24 = vpack.c.bf16 %v1535_v15, %v1527_v63  ;;  %v1574_v28 = vpack.c.bf16 %v1536_v49, %v1528_v14  ;;  %v638_v14 = vld [vmem:[#allocation7 + $0x10] sm:$0xff] }
 0x55c   : > { %1596 = vmatpush.bf16.msra.mxu1 %v1573_v24  ;;  %1609 = vmatpush.bf16.msra.mxu2 %v1574_v28 }
 0x55d   : > { %v1506_v32 = vpop.permute.xlu0 %1505 }
 0x55e   : > { %v1508_v34 = vpop.permute.xlu1 %1507 }
 0x55f   : > { %v1509_v41 = vsel %vm867_vm0, %v1506_v32, %v1508_v34  ;;  %v1510_v50 = vsel %vm867_vm0, %v1508_v34, %v1506_v32 }
 0x560   : > { %v1511_v25 = vmul.f32 %v1510_v50, %v2851_v55  ;;  %v1512_v26 = vmul.f32 %v1509_v41, %v2854_v56 }
 0x565   : > { %v1516_v46 = vpop.permute.xlu0 %1515 }
 0x566   : > { %v1517_v47 = vsel %vm886_vm2, %v1514_v3, %v1516_v46  ;;  %v1518_v42 = vsel %vm886_vm2, %v1516_v46, %v1514_v3 }
 0x567   : > { %v1519_v43 = vmul.f32 %v1518_v42, %v2860_v58  ;;  %v1520_v21 = vmul.f32 %v1517_v47, %v2863_v59 }
 0x569   : > { %v1571_v22 = vpack.c.bf16 %v1519_v43, %v1511_v25  ;;  %v1572_v44 = vpack.c.bf16 %v1520_v21, %v1512_v26 }
 0x56b   : > { %1597 = vmatpush.bf16.msra.mxu1 %v1571_v22  ;;  %1610 = vmatpush.bf16.msra.mxu2 %v1572_v44 }
 0x56d   : > { %v1721_v15 = vpop.permute.xlu0 %1720 }
 0x56e   : > { %2099 = vmatmul.msk.bf16.vlgmr.msra.gmra.mxu1 %vm1208_vm11, %v655_v45  ;;  %2100 = vmatmul.msk.bf16.vlgmr.msra.gmra.mxu2 %vm1208_vm11, %v655_v45 }
 0x575   : > { %v1728_v49 = vpop.permute.xlu0 %1727 }
 0x587   : > { %v1685_v37 = vpop.xlane.xlu2 %1684 }
 0x588   : > { %v1687_v51 = vmul.f32 0.00390625, %v1685_v37 }
 0x589   : > { %v1682_v54 = vpop.xlane.xlu1 %1681 }
 0x58a   : > { %v1689_v48 = vmul.f32 %v1687_v51, %v613_v8  ;;  %v1686_v18 = vmul.f32 0.00390625, %v1682_v54  ;;  %v639_v54 = vld [vmem:[#allocation7 + $0x18] sm:$0xff] }
 0x58c   : > { %v1691_v23 = vadd.f32 %v1689_v48, %v623_v7  ;;  %v1688_v16 = vmul.f32 %v1686_v18, %v612_v52  ;;  %v2123_v52 = vld [vmem:[#allocation12 + $0x10] sm:$0xff]  ;;  %v635_v48 = vld [vmem:[#allocation6 + $0x18] sm:$0xff] }
 0x58e   : > { %v1693_v27 = vmax.f32 %v1691_v23, 0.0  ;;  %v1690_v62 = vadd.f32 %v1688_v16, %v622_v20 }
 0x590   : > { %v1692_v53 = vmax.f32 %v1690_v62, 0.0  ;;  %v2236_v62 = vld [vmem:[%s3556_s11 + $0x10] ss:$0 sm:$0xff] }
 0x592   : > { %v1694_v57 = vpack.c.bf16 %v1693_v27, %v1692_v53 }
 0x594   : > { %1705 = vmatpush.bf16.msrb.mxu1 %v1694_v57  ;;  %v2237_v57 = vld [vmem:[%s3556_s11 + $0x18] ss:$0 sm:$0xff] }
 0x597   : > { %2107 = vmatmul.msk.bf16.vlgmr.msrb.gmra.mxu1 %vm729_vm1, %v643_v5 }
 0x5eb   : > { %v1599_v9 = vpop.f32.mrf.mxu1 }
 0x5f1   : > { %v1612_v10 = vpop.f32.mrf.mxu2 }
 0x5f3   : > { %v1601_v30 = vpop.f32.mrf.mxu1 }
 0x5f9   : > { %v1614_v13 = vpop.f32.mrf.mxu2 }
 0x614   : > { %v1707_v31 = vpop.f32.mrf.mxu1 }
 0x615   : > { %1713 = vperm.xlu0 %2227, %v1707_v31  }
 0x61c   : > { %v1709_v63 = vpop.f32.mrf.mxu1 }
 0x61d   : > { %1618 = vperm.xlu0 %2227, %v634_v29  }
 0x625   : > { %1625 = vperm.xlu0 %2227, %v638_v14  }
 0x687   : > { %v1714_v24 = vpop.permute.xlu0 %1713 }
 0x688   : > { %v1716_v28 = vadd.f32 %v1714_v24, %v1599_v9  ;;  %v1717_v32 = vadd.f32 %v1714_v24, %v1612_v10 }
 0x68a   : > { %v1723_v34 = vmul.f32 %v1721_v15, %v1716_v28  ;;  %v1724_v41 = vmul.f32 %v1721_v15, %v1717_v32 }
 0x68c   : > { %v1730_v50 = vadd.f32 %v1728_v49, %v1723_v34  ;;  %v1731_v3 = vadd.f32 %v1728_v49, %v1724_v41 }
 0x68e   : > { %v3429_v46 = vmax.f32 %v1730_v50, 0.0  ;;  %v3431_v47 = vmax.f32 %v1731_v3, 0.0 }
 0x68f   : > { %v1619_v42 = vpop.permute.xlu0 %1618 }
 0x690   : > { %1776 = vrot.lane.b32.xlu0 %v3429_v46, %s2524_s28  ;;  %1792 = vrot.lane.b32.xlu2 %v3429_v46, %s2526_s14  ;;  %v1621_v25 = vmul.f32 %v1619_v42, %v1599_v9  ;;  %v1622_v26 = vmul.f32 %v1619_v42, %v1612_v10 }
 0x691   : > { %1794 = vrot.lane.b32.xlu1 %v3431_v47, %s2526_s14  ;;  %s3573_s14 = sld [smem:[#allocation24_spill]] }
 0x697   : > { %v1626_v43 = vpop.permute.xlu0 %1625 }
 0x698   : > { %v1628_v21 = vadd.f32 %v1626_v43, %v1621_v25  ;;  %v1629_v22 = vadd.f32 %v1626_v43, %v1622_v26  ;;  %1786 = vrot.lane.b32.xlu2 %v3431_v47, %s2525_s23  ;;  %1778 = vrot.lane.b32.xlu0 %v3431_v47, %s2524_s28 }
 0x699   : > { %1768 = vrot.lane.b32.xlu1 %v3429_v46, %s2523_s27 }
 0x69a   : > { %v1630_v44 = vmax.f32 %v1628_v21, 0.0  ;;  %v1631_v45 = vmax.f32 %v1629_v22, 0.0 }
 0x69c   : > { %v1632_v8 = vpack.c.bf16 %v1630_v44, %v1630_v44  ;;  %v1633_v37 = vpack.c.bf16 %v1631_v45, %v1631_v45 }
 0x69e   : > { %v1643_v51 = vsel %vm786_vm9, %v1632_v8, 0  ;;  %v1646_v7 = vsel %vm786_vm9, %v1633_v37, 0 }
 0x69f   : > { %1655 = vmatpush.bf16.msrb.mxu0 %v1643_v51  ;;  %1669 = vmatpush.bf16.msra.mxu3 %v1646_v7 }
 0x6a0   : > { %1750 = vrot.lane.b32.xlu2 %v3429_v46, %s2521_s4  ;;  %1784 = vrot.lane.b32.xlu0 %v3429_v46, %s2525_s23 }
 0x6a1   : > { %1752 = vrot.lane.b32.xlu1 %v3431_v47, %s2521_s4 }
 0x6a2   : > { %2105 = vmatmul.msk.bf16.vlgmr.msrb.gmra.mxu0 %vm782_vm10, %v2123_v52  ;;  %2106 = vmatmul.msk.bf16.vlgmr.msra.gmra.mxu3 %vm782_vm10, %v2123_v52 }
 0x6a8   : > { %1760 = vrot.lane.b32.xlu2 %v3431_v47, %s2522_s16  ;;  %1770 = vrot.lane.b32.xlu0 %v3431_v47, %s2523_s27 }
 0x6a9   : > { %1734 = vrot.lane.b32.xlu1 %v3429_v46, %s2519_s22 }
 0x6b0   : > { %1742 = vrot.lane.b32.xlu2 %v3429_v46, %s2520_s15  ;;  %1758 = vrot.lane.b32.xlu0 %v3429_v46, %s2522_s16 }
 0x6b1   : > { %1744 = vrot.lane.b32.xlu1 %v3431_v47, %s2520_s15 }
 0x6b8   : > { %1854 = vperm.xlu2 %2229, %v639_v54   ;;  %1736 = vrot.lane.b32.xlu0 %v3431_v47, %s2519_s22  ;;  %s3572_s22 = sshll.u32 %s3576_s30, 5 }
 0x6b9   : > { %s600_s21 = scalar_lea.vmem %s3573_s14, %s3572_s22 }
 0x6c0   : > { %1847 = vperm.xlu0 %2227, %v635_v48  }
 0x6ea   : > { %v1793_v18 = vpop.permute.xlu2 %1792 }
 0x6f2   : > { %v1787_v63 = vpop.permute.xlu2 %1786 }
 0x6fa   : > { %v1751_v34 = vpop.permute.xlu2 %1750 }
 0x702   : > { %v1777_v20 = vpop.permute.xlu0 %1776  ;;  %v1761_v45 = vpop.permute.xlu2 %1760 }
 0x703   : > { %v1795_v23 = vpop.permute.xlu1 %1794 }
 0x704   : > { %v1796_v16 = vsel %vm1006_vm8, %v1793_v18, %v1795_v23  ;;  %v1797_v27 = vsel %vm1006_vm8, %v1795_v23, %v1793_v18 }
 0x705   : > { %v1798_v53 = vmul.f32 %v2236_v62, %v1796_v16  ;;  %v1799_v5 = vmul.f32 %v2237_v57, %v1797_v27 }
 0x707   : > { %v1808_v9 = vpack.c.bf16 %v1798_v53, %v1798_v53  ;;  %v1809_v30 = vpack.c.bf16 %v1799_v5, %v1799_v5 }
 0x709   : > { %v1814_v31 = vsel %vm786_vm9, %v1808_v9, 0  ;;  %v1817_v29 = vsel %vm786_vm9, %v1809_v30, 0 }
 0x70a   : > { %1822 = vmatpush.bf16.msra.mxu0 %v1814_v31  ;;  %1835 = vmatpush.bf16.msrb.mxu3 %v1817_v29  ;;  %v1779_v14 = vpop.permute.xlu0 %1778  ;;  %v1743_v27 = vpop.permute.xlu2 %1742  ;;  %v656_v31 = vld [vmem:[#allocation13 + $0x8] sm:$0xf] }
 0x70b   : > { %v1769_v10 = vpop.permute.xlu1 %1768  ;;  %v1780_v13 = vsel %vm968_vm6, %v1777_v20, %v1779_v14  ;;  %v1781_v15 = vsel %vm968_vm6, %v1779_v14, %v1777_v20 }
 0x70c   : > { %v1782_v41 = vmul.f32 %v1780_v13, %v2960_v33  ;;  %v1783_v50 = vmul.f32 %v1781_v15, %v2963_v35 }
 0x712   : > { %v1785_v49 = vpop.permute.xlu0 %1784 }
 0x713   : > { %v1788_v24 = vsel %vm987_vm7, %v1785_v49, %v1787_v63  ;;  %v1789_v28 = vsel %vm987_vm7, %v1787_v63, %v1785_v49  ;;  %v1753_v32 = vpop.permute.xlu1 %1752 }
 0x714   : > { %v1790_v3 = vmul.f32 %v1788_v24, %v2979_v2  ;;  %v1791_v42 = vmul.f32 %v1789_v28, %v2982_v4  ;;  %v1766_v2 = vmul.f32 %v3429_v46, %v2926_v0  ;;  %v1767_v4 = vmul.f32 %v3431_v47, %v2929_v1 }
 0x716   : > { %v1806_v25 = vpack.c.bf16 %v1790_v3, %v1782_v41  ;;  %v1807_v26 = vpack.c.bf16 %v1791_v42, %v1783_v50 }
 0x718   : > { %1823 = vmatpush.bf16.msra.mxu0 %v1806_v25  ;;  %1836 = vmatpush.bf16.msrb.mxu3 %v1807_v26 }
 0x71a   : > { %v1771_v43 = vpop.permute.xlu0 %1770 }
 0x71b   : > { %v1772_v21 = vsel %vm949_vm5, %v1769_v10, %v1771_v43  ;;  %v1773_v22 = vsel %vm949_vm5, %v1771_v43, %v1769_v10  ;;  %v1735_v35 = vpop.permute.xlu1 %1734  ;;  %v1855_v10 = vpop.permute.xlu2 %1854 }
 0x71c   : > { %v1774_v44 = vmul.f32 %v1772_v21, %v2941_v11  ;;  %v1775_v33 = vmul.f32 %v1773_v22, %v2944_v12  ;;  %v1754_v11 = vsel %vm905_vm3, %v1751_v34, %v1753_v32  ;;  %v1755_v12 = vsel %vm905_vm3, %v1753_v32, %v1751_v34  ;;  %v2124_v32 = vld [vmem:[#allocation12 + $0x18] sm:$0xff] }
 0x71d   : > { %v1756_v46 = vmul.f32 %v1755_v12, %v2885_v17  ;;  %v1757_v47 = vmul.f32 %v1754_v11, %v2888_v19 }
 0x71e   : > { %v1804_v8 = vpack.c.bf16 %v1774_v44, %v1766_v2  ;;  %v1805_v37 = vpack.c.bf16 %v1775_v33, %v1767_v4 }
 0x71f   : > { %v1657_v51 = vpop.f32.mrf.mxu0 }
 0x720   : > { %v1676_v7 = vadd.f32 %v1657_v51, %v3278_v38  ;;  %1824 = vmatpush.bf16.msra.mxu0 %v1804_v8  ;;  %1837 = vmatpush.bf16.msrb.mxu3 %v1805_v37 }
 0x722   : > { %v1759_v52 = vpop.permute.xlu0 %1758 }
 0x723   : > { %v1762_v0 = vsel %vm924_vm4, %v1759_v52, %v1761_v45  ;;  %v1763_v1 = vsel %vm924_vm4, %v1761_v45, %v1759_v52  ;;  %v1745_v18 = vpop.permute.xlu1 %1744 }
 0x724   : > { %v1764_v38 = vmul.f32 %v1763_v1, %v2906_v39  ;;  %v1765_v54 = vmul.f32 %v1762_v0, %v2909_v40  ;;  %v1746_v62 = vsel %vm886_vm2, %v1743_v27, %v1745_v18  ;;  %v1747_v17 = vsel %vm886_vm2, %v1745_v18, %v1743_v27 }
 0x725   : > { %v1671_v48 = vpop.f32.mrf.mxu3  ;;  %v1749_v53 = vmul.f32 %v1746_v62, %v2863_v59 }
 0x726   : > { %v1677_v20 = vadd.f32 %v1671_v48, %v3281_v6  ;;  %v1802_v23 = vpack.c.bf16 %v1764_v38, %v1756_v46  ;;  %v1803_v16 = vpack.c.bf16 %v1765_v54, %v1757_v47  ;;  %v1748_v6 = vmul.f32 %v1747_v17, %v2860_v58 }
 0x727   : > { %v1659_v29 = vpop.f32.mrf.mxu0 }
 0x728   : > { %1825 = vmatpush.bf16.msra.mxu0 %v1802_v23  ;;  %1838 = vmatpush.bf16.msrb.mxu3 %v1803_v16  ;;  %v1678_v21 = vadd.f32 %v1659_v29, %v3287_v60 }
 0x72a   : > { %v1737_v19 = vpop.permute.xlu0 %1736 }
 0x72b   : > { %v1738_v39 = vsel %vm867_vm0, %v1735_v35, %v1737_v19  ;;  %v1739_v40 = vsel %vm867_vm0, %v1737_v19, %v1735_v35 }
 0x72c   : > { %v1740_v57 = vmul.f32 %v1739_v40, %v2851_v55  ;;  %v1741_v5 = vmul.f32 %v1738_v39, %v2854_v56 }
 0x72d   : > { %v1673_v36 = vpop.f32.mrf.mxu3 }
 0x72e   : > { %v1800_v9 = vpack.c.bf16 %v1748_v6, %v1740_v57  ;;  %v1801_v30 = vpack.c.bf16 %v1749_v53, %v1741_v5  ;;  %v1679_v22 = vadd.f32 %v1673_v36, %v3289_v61 }
 0x730   : > { %1826 = vmatpush.bf16.msra.mxu0 %v1800_v9  ;;  %1839 = vmatpush.bf16.msrb.mxu3 %v1801_v30 }
 0x732   : > { %v1848_v63 = vpop.permute.xlu0 %1847 }
 0x733   : > { %2108 = vmatmul.msk.bf16.vlgmr.msra.gmra.mxu0 %vm1208_vm11, %v656_v31  ;;  %2109 = vmatmul.msk.bf16.vlgmr.msrb.gmra.mxu3 %vm1208_vm11, %v656_v31 }
 0x7b0   : > { %v1828_v14 = vpop.f32.mrf.mxu0 }
 0x7b1   : > { %v1850_v58 = vmul.f32 %v1848_v63, %v1828_v14 }
 0x7b3   : > { %v1857_v59 = vadd.f32 %v1855_v10, %v1850_v58 }
 0x7b5   : > { %v1859_v13 = vmax.f32 %v1857_v59, 0.0 }
 0x7b6   : > { %v1841_v55 = vpop.f32.mrf.mxu3 }
 0x7b7   : > { %v1861_v56 = vpack.c.bf16 %v1859_v13, %v1859_v13  ;;  %v1851_v15 = vmul.f32 %v1848_v63, %v1841_v55 }
 0x7b8   : > { %v1830_v49 = vpop.f32.mrf.mxu0 }
 0x7b9   : > { %v1858_v24 = vadd.f32 %v1855_v10, %v1851_v15  ;;  %v1872_v28 = vsel %vm786_vm9, %v1861_v56, 0 }
 0x7ba   : > { %1884 = vmatpush.bf16.msrb.mxu2 %v1872_v28 }
 0x7bb   : > { %v1860_v34 = vmax.f32 %v1858_v24, 0.0 }
 0x7bd   : > { %v1862_v41 = vpack.c.bf16 %v1860_v34, %v1860_v34  ;;  %2114 = vmatmul.msk.bf16.vlgmr.msrb.gmra.mxu2 %vm782_vm10, %v2124_v32 }
 0x7be   : > { %v1843_v50 = vpop.f32.mrf.mxu3 }
 0x7bf   : > { %v1875_v3 = vsel %vm786_vm9, %v1862_v41, 0 }
 0x7c0   : > { %1898 = vmatpush.bf16.msra.mxu1 %v1875_v3 }
 0x7c3   : > { %2115 = vmatmul.msk.bf16.vlgmr.msra.gmra.mxu1 %vm782_vm10, %v2124_v32 }
 0x840   : > { %v1886_v42 = vpop.f32.mrf.mxu2  ;;  %v1900_v25 = vpop.f32.mrf.mxu1 }
 0x841   : > { %v1905_v26 = vadd.f32 %v1886_v42, %v1676_v7  ;;  %v1906_v43 = vadd.f32 %v1900_v25, %v1677_v20 }
 0x843   : > { %1909 = vst [vmem:[%s600_s21] sm:$0xff] %v1905_v26 }
 0x844   : > { %1910 = vst [vmem:[%s600_s21 + $0x8] sm:$0xff] %v1906_v43 }
 0x848   : > { %v1888_v44 = vpop.f32.mrf.mxu2  ;;  %v1902_v33 = vpop.f32.mrf.mxu1 }
 0x849   : > { %v1907_v35 = vadd.f32 %v1888_v44, %v1678_v21  ;;  %v1908_v2 = vadd.f32 %v1902_v33, %v1679_v22 }
 0x84b   : > { %1911 = vst [vmem:[%s600_s21 + $0x10] sm:$0xff] %v1907_v35 }
 0x84c   : > { %1912 = vst [vmem:[%s600_s21 + $0x18] sm:$0xff] %v1908_v2 }
 0x84d PF: > { %s3574_s30 = sld [smem:[#allocation20_spill]] }
 0x853   : > { %s29_s29 = sadd.s32 1, %s3574_s30  }
 0x854   : > { %p26_p7 = scmp.ge.s32.totalorder %s29_s29, 4  }
 0x856   :  { %28 = sbr.rel (!%p26_p7) target bundleno = 10 (0xa), region = 139 }
 0x85b   :  { %1934 = vsyncpa [#allocation3], 1 }
 0x85c   :  { %1936 = vsyncpa [#allocation3 + $0x1], 1 }
 0x85d   :  { %1937 = vsyncpa [#allocation5], 1 }
 0x85e   :  { %1938 = vsyncpa [#allocation8], 1 }
 0x85f   :  { %1939 = vsyncpa [#allocation11], 1 }
 0x860   :  { %1940 = vsyncpa [#allocation14], 1 }

</bundles_post_ra>
